<compile_context>
chip_gen: v5e
topology: v5e:2x2
jax: 0.10.0
libtpu: 0.0.40
codegen_flags: <defaults>
</compile_context>

<pallas_src>
import jax
import jax.numpy as jnp
from jax.experimental import pallas as pl
from jax.experimental.pallas import tpu as pltpu

LANE = 128  # all feature dims are padded to this lane-dense width


# --------------------------------------------------------------------------
# Fused kernel: all GINConv layers + global_add_pool + final MLP
# grid = (num_layers, num_node_row_tiles)
# --------------------------------------------------------------------------
def gin_fused_kernel(x0_ref, adj_ref, w1_ref, b1_ref, w2_ref, b2_ref,
                     pool_ref, mw1_ref, mb1_ref, mw2_ref, mb2_ref,
                     out_ref, x_buf, pooled_acc):
    layer = pl.program_id(0)
    tile = pl.program_id(1)
    n_layers = pl.num_programs(0)
    n_tiles = pl.num_programs(1)
    tm = adj_ref.shape[0]

    # First grid step: seed the ping-pong buffer with the input features and
    # zero the pooling accumulator.
    @pl.when(jnp.logical_and(layer == 0, tile == 0))
    def _init():
        x_buf[0] = x0_ref[...]
        pooled_acc[...] = jnp.zeros_like(pooled_acc)

    cur = layer % 2          # buffer holding this layer's input features
    nxt = 1 - cur            # buffer receiving this layer's output features

    x_prev = x_buf[cur]      # [N_pad, C] bf16, resident in VMEM across tiles/layers

    # Aggregation: (A + I) @ x  on the MXU (eps = 0; self term folded into adj).
    agg = jnp.dot(adj_ref[...], x_prev, preferred_element_type=jnp.float32)

    # Linear1 with BatchNorm(eval) folded into the weights, then ReLU.
    h = jnp.dot(agg.astype(jnp.bfloat16), w1_ref[0],
                preferred_element_type=jnp.float32) + b1_ref[0]
    h = jnp.maximum(h, 0.0)

    # Linear2, then the outer .relu() of GIN.forward.
    y = jnp.dot(h.astype(jnp.bfloat16), w2_ref[0],
                preferred_element_type=jnp.float32) + b2_ref[0]
    y = jnp.maximum(y, 0.0)
    y_bf = y.astype(jnp.bfloat16)

    # Store this row tile of the new node features into the other buffer.
    row = pl.multiple_of(tile * tm, tm)
    x_buf[nxt, pl.ds(row, tm), :] = y_bf

    is_last_layer = layer == n_layers - 1

    # global_add_pool rides along with the last layer's row tiles.
    @pl.when(is_last_layer)
    def _pool():
        pooled_acc[...] += jnp.dot(pool_ref[...].astype(jnp.bfloat16), y_bf,
                                   preferred_element_type=jnp.float32)

    # Final MLP (Linear -> ReLU -> dropout(identity in eval) -> Linear) at the end.
    @pl.when(jnp.logical_and(is_last_layer, tile == n_tiles - 1))
    def _final():
        pooled = pooled_acc[...]
        h2 = jnp.dot(pooled.astype(jnp.bfloat16), mw1_ref[...],
                     preferred_element_type=jnp.float32) + mb1_ref[...]
        h2 = jnp.maximum(h2, 0.0)
        # TODO(synk): dropout(p=0.5) in the final MLP is identity in eval mode.
        out_ref[...] = jnp.dot(h2.astype(jnp.bfloat16), mw2_ref[...],
                               preferred_element_type=jnp.float32) + mb2_ref[...]


# --------------------------------------------------------------------------
# Helpers
# --------------------------------------------------------------------------
def _round_up(a, b):
    return (a + b - 1) // b * b


def _pad2(a, rows, cols):
    return jnp.pad(a, ((0, rows - a.shape[0]), (0, cols - a.shape[1])))


# --------------------------------------------------------------------------
# Wrapper: plain-JAX glue (BN fold, padding, A+I and pooling matrices) + kernel call
# --------------------------------------------------------------------------
def gin_forward(x, edge_index, batch, num_graphs, params, *, tm=128):
    n, in_c = x.shape
    num_layers = len(params["convs"])
    hid = params["convs"][0]["w1"].shape[1]
    out_c = params["mlp"]["w2"].shape[1]
    C = LANE
    assert max(in_c, hid, out_c) <= C, "feature dims must fit the padded lane width"

    n_pad = _round_up(n, tm)
    g_pad = _round_up(max(num_graphs, 8), 8)
    n_tiles = n_pad // tm

    f32, bf16 = jnp.float32, jnp.bfloat16
    inv_std = 1.0 / jnp.sqrt(1.0 + 1e-5)     # BN eval: running_mean=0, running_var=1

    # Fold BatchNorm into Linear1 and pad everything to the lane width.
    w1s, b1s, w2s, b2s = [], [], [], []
    for layer in params["convs"]:
        scale = layer["gamma"] * inv_std                       # [1, H]
        w1s.append(_pad2(layer["w1"] * scale, C, C).astype(bf16))
        b1s.append(_pad2(layer["b1"] * scale + layer["beta"], 1, C).astype(f32))
        w2s.append(_pad2(layer["w2"], C, C).astype(bf16))
        b2s.append(_pad2(layer["b2"], 1, C).astype(f32))
    w1s = jnp.stack(w1s)   # [L, C, C] bf16
    b1s = jnp.stack(b1s)   # [L, 1, C] f32
    w2s = jnp.stack(w2s)   # [L, C, C] bf16
    b2s = jnp.stack(b2s)   # [L, 1, C] f32

    m = params["mlp"]
    mw1 = _pad2(m["w1"], C, C).astype(bf16)
    mb1 = _pad2(m["b1"], 1, C).astype(f32)
    mw2 = _pad2(m["w2"], C, C).astype(bf16)
    mb2 = _pad2(m["b2"], 1, C).astype(f32)

    # (A + I): A[i, j] = #edges j -> i; +I folds the (1+eps)*x_i self term (eps = 0).
    # Entries are small integer counts -> exact in bf16 (up to 256 parallel edges).
    src, dst = edge_index[0], edge_index[1]
    adj = jnp.zeros((n_pad, n_pad), f32).at[dst, src].add(1.0)
    adj = (adj + jnp.eye(n_pad, dtype=f32)).astype(bf16)

    # Pooling one-hot; padded nodes map to an out-of-range graph id (excluded).
    batch_pad = jnp.full((n_pad,), g_pad, jnp.int32).at[:n].set(batch.astype(jnp.int32))
    pool = (jnp.arange(g_pad, dtype=jnp.int32)[:, None] == batch_pad[None, :]).astype(f32)

    x0 = _pad2(x, n_pad, C).astype(bf16)

    flops = (2 * num_layers * (n_pad * n_pad * C + 2 * n_pad * C * C)
             + 2 * (g_pad * n_pad * C + 2 * g_pad * C * C))
    bytes_accessed = (num_layers * n_pad * n_pad * 2          # adj streamed per layer
                      + n_pad * C * 2                         # x0
                      + num_layers * (2 * C * C * 2 + 2 * C * 4)
                      + num_layers * g_pad * n_pad * 4        # pool tiles
                      + 2 * C * C * 2 + 2 * C * 4             # final MLP params
                      + g_pad * C * 4)                        # output

    out = pl.pallas_call(
        gin_fused_kernel,
        out_shape=jax.ShapeDtypeStruct((g_pad, C), f32),
        grid_spec=pltpu.PrefetchScalarGridSpec(
            num_scalar_prefetch=0,
            grid=(num_layers, n_tiles),
            in_specs=[
                pl.BlockSpec((n_pad, C), lambda l, i: (0, 0)),      # x0 (resident)
                pl.BlockSpec((tm, n_pad), lambda l, i: (i, 0)),     # adj row tile
                pl.BlockSpec((1, C, C), lambda l, i: (l, 0, 0)),    # w1 (per layer)
                pl.BlockSpec((1, 1, C), lambda l, i: (l, 0, 0)),    # b1
                pl.BlockSpec((1, C, C), lambda l, i: (l, 0, 0)),    # w2
                pl.BlockSpec((1, 1, C), lambda l, i: (l, 0, 0)),    # b2
                pl.BlockSpec((g_pad, tm), lambda l, i: (0, i)),     # pool column tile
                pl.BlockSpec((C, C), lambda l, i: (0, 0)),          # final MLP w1
                pl.BlockSpec((1, C), lambda l, i: (0, 0)),          # final MLP b1
                pl.BlockSpec((C, C), lambda l, i: (0, 0)),          # final MLP w2
                pl.BlockSpec((1, C), lambda l, i: (0, 0)),          # final MLP b2
            ],
            out_specs=pl.BlockSpec((g_pad, C), lambda l, i: (0, 0)),
            scratch_shapes=[
                pltpu.VMEM((2, n_pad, C), bf16),    # ping-pong node features
                pltpu.VMEM((g_pad, C), f32),        # global_add_pool accumulator
            ],
        ),
        compiler_params=pltpu.CompilerParams(
            dimension_semantics=("arbitrary", "arbitrary"),
            vmem_limit_bytes=32 * 1024 * 1024,
        ),
        cost_estimate=pl.CostEstimate(flops=flops, transcendentals=0,
                                      bytes_accessed=bytes_accessed),
    )(x0, adj, w1s, b1s, w2s, b2s, pool, mw1, mb1, mw2, mb2)

    return out[:num_graphs, :out_c]


# --------------------------------------------------------------------------
# Parameter init (mirrors module __init__ shapes; BN in eval mode)
# --------------------------------------------------------------------------
def init_params(key, in_channels, hidden_channels, out_channels, num_layers):
    params = {"convs": []}
    c_in = in_channels
    for _ in range(num_layers):
        key, k1, k2, k3, k4 = jax.random.split(key, 5)
        params["convs"].append(dict(
            w1=0.1 * jax.random.normal(k1, (c_in, hidden_channels), jnp.float32),
            b1=0.1 * jax.random.normal(k2, (1, hidden_channels), jnp.float32),
            gamma=jnp.ones((1, hidden_channels), jnp.float32),   # BatchNorm weight
            beta=jnp.zeros((1, hidden_channels), jnp.float32),   # BatchNorm bias
            w2=0.1 * jax.random.normal(k3, (hidden_channels, hidden_channels), jnp.float32),
            b2=0.1 * jax.random.normal(k4, (1, hidden_channels), jnp.float32),
        ))
        c_in = hidden_channels
    key, k1, k2, k3, k4 = jax.random.split(key, 5)
    params["mlp"] = dict(
        w1=0.1 * jax.random.normal(k1, (hidden_channels, hidden_channels), jnp.float32),
        b1=0.1 * jax.random.normal(k2, (1, hidden_channels), jnp.float32),
        w2=0.1 * jax.random.normal(k3, (hidden_channels, out_channels), jnp.float32),
        b2=0.1 * jax.random.normal(k4, (1, out_channels), jnp.float32),
    )
    return params


# --------------------------------------------------------------------------
# Pure-JAX references
#   * gin_forward_ref       : literal module order, pure f32 (the spec)
#   * gin_forward_ref_mixed : same math as the kernel (A+I / BN fold, bf16 MXU
#                             operands, f32 accumulation) for a tight check
# --------------------------------------------------------------------------
def gin_forward_ref(x, edge_index, batch, num_graphs, params):
    n = x.shape[0]
    src, dst = edge_index[0], edge_index[1]
    adj = jnp.zeros((n, n), jnp.float32).at[dst, src].add(1.0)
    inv_std = 1.0 / jnp.sqrt(1.0 + 1e-5)
    h = x
    for layer in params["convs"]:
        agg = h + adj @ h
        z = agg @ layer["w1"] + layer["b1"]
        z = z * (layer["gamma"] * inv_std) + layer["beta"]
        z = jnp.maximum(z, 0.0)
        z = z @ layer["w2"] + layer["b2"]
        h = jnp.maximum(z, 0.0)
    pool = (jnp.arange(num_graphs)[:, None] == batch[None, :]).astype(jnp.float32)
    pooled = pool @ h
    m = params["mlp"]
    z = jnp.maximum(pooled @ m["w1"] + m["b1"], 0.0)
    return z @ m["w2"] + m["b2"]


def gin_forward_ref_mixed(x, edge_index, batch, num_graphs, params):
    bf = jnp.bfloat16

    def mm(a, b):
        return jnp.dot(a.astype(bf), b.astype(bf), preferred_element_type=jnp.float32)

    n = x.shape[0]
    src, dst = edge_index[0], edge_index[1]
    adj = jnp.zeros((n, n), jnp.float32).at[dst, src].add(1.0) + jnp.eye(n, dtype=jnp.float32)
    inv_std = 1.0 / jnp.sqrt(1.0 + 1e-5)
    h = x
    for layer in params["convs"]:
        scale = layer["gamma"] * inv_std
        agg = mm(adj, h)
        z = jnp.maximum(mm(agg, layer["w1"] * scale)
                        + (layer["b1"] * scale + layer["beta"]), 0.0)
        h = jnp.maximum(mm(z, layer["w2"]) + layer["b2"], 0.0)
    pool = (jnp.arange(num_graphs)[:, None] == batch[None, :]).astype(jnp.float32)
    pooled = mm(pool, h)
    m = params["mlp"]
    z = jnp.maximum(mm(pooled, m["w1"]) + m["b1"], 0.0)
    return mm(z, m["w2"]) + m["b2"]


if __name__ == "__main__":
    # Small, module-consistent shapes (two row tiles to exercise the tiling path).
    N = 200           # nodes
    E = 600           # edges
    G = 4             # graphs
    IN_C, HID_C, OUT_C = 16, 64, 8
    NUM_LAYERS = 2

    key = jax.random.PRNGKey(0)
    key, kx, ks, kd = jax.random.split(key, 4)
    x = jax.random.normal(kx, (N, IN_C), jnp.float32)
    src = jax.random.randint(ks, (E,), 0, N, jnp.int32)
    dst = jax.random.randint(kd, (E,), 0, N, jnp.int32)
    edge_index = jnp.stack([src, dst], axis=0)                       # [2, E]
    batch = jnp.repeat(jnp.arange(G, dtype=jnp.int32), N // G)       # [N]

    params = init_params(key, IN_C, HID_C, OUT_C, NUM_LAYERS)

    out = gin_forward(x, edge_index, batch, G, params)
    out = jax.block_until_ready(out)
    assert out.shape == (G, OUT_C)

    # Tight check against a reference that uses the same precision policy
    # (bf16 MXU operands, f32 accumulation) — validates the kernel plumbing.
    ref_mixed = gin_forward_ref_mixed(x, edge_index, batch, G, params)
    assert jnp.allclose(out, ref_mixed, rtol=1e-2, atol=1e-2)

    # Coarser check against the literal f32 module semantics (bf16-operand
    # rounding is the only source of deviation).
    ref_f32 = gin_forward_ref(x, edge_index, batch, G, params)
    assert jnp.allclose(out, ref_f32, rtol=1e-1, atol=2.5e-1)

    print("KERNEL_OK")
</pallas_src>

<mosaic_0001>
module attributes {stable_mosaic.version = 11 : i64} {
  func.func @gin_fused_kernel(%arg0: i32, %arg1: i32, %arg2: memref<256x128xbf16, #tpu.memory_space<vmem>>, %arg3: memref<128x256xbf16, #tpu.memory_space<vmem>>, %arg4: memref<1x128x128xbf16, #tpu.memory_space<vmem>>, %arg5: memref<1x1x128xf32, #tpu.memory_space<vmem>>, %arg6: memref<1x128x128xbf16, #tpu.memory_space<vmem>>, %arg7: memref<1x1x128xf32, #tpu.memory_space<vmem>>, %arg8: memref<8x128xf32, #tpu.memory_space<vmem>>, %arg9: memref<128x128xbf16, #tpu.memory_space<vmem>>, %arg10: memref<1x128xf32, #tpu.memory_space<vmem>>, %arg11: memref<128x128xbf16, #tpu.memory_space<vmem>>, %arg12: memref<1x128xf32, #tpu.memory_space<vmem>>, %arg13: memref<8x128xf32, #tpu.memory_space<vmem>>, %arg14: memref<2x256x128xbf16, #tpu.memory_space<vmem>>, %arg15: memref<8x128xf32, #tpu.memory_space<vmem>>) attributes {dimension_semantics = [#tpu.dimension_semantics<arbitrary>, #tpu.dimension_semantics<arbitrary>], iteration_bounds = array<i64: 2, 2>, scalar_prefetch = 0 : i64, scratch_operands = 2 : i64, tpu.core_type = #tpu.core_type<tc>, window_params = [{pipeline_mode = #tpu.pipeline_mode<synchronous>, transform_indices = @transform_0, window_bounds = array<i64: 256, 128>}, {transform_indices = @transform_1, window_bounds = array<i64: 128, 256>}, {transform_indices = @transform_2, window_bounds = array<i64: 1, 128, 128>}, {transform_indices = @transform_3, window_bounds = array<i64: 1, 1, 128>}, {transform_indices = @transform_4, window_bounds = array<i64: 1, 128, 128>}, {transform_indices = @transform_5, window_bounds = array<i64: 1, 1, 128>}, {transform_indices = @transform_6, window_bounds = array<i64: 8, 128>}, {pipeline_mode = #tpu.pipeline_mode<synchronous>, transform_indices = @transform_7, window_bounds = array<i64: 128, 128>}, {pipeline_mode = #tpu.pipeline_mode<synchronous>, transform_indices = @transform_8, window_bounds = array<i64: 1, 128>}, {pipeline_mode = #tpu.pipeline_mode<synchronous>, transform_indices = @transform_9, window_bounds = array<i64: 128, 128>}, {pipeline_mode = #tpu.pipeline_mode<synchronous>, transform_indices = @transform_10, window_bounds = array<i64: 1, 128>}, {pipeline_mode = #tpu.pipeline_mode<synchronous>, transform_indices = @transform_11, window_bounds = array<i64: 8, 128>}]} {
    %c0_i32 = arith.constant 0 : i32
    %0 = arith.cmpi eq, %arg0, %c0_i32 : i32
    %c0_i32_0 = arith.constant 0 : i32
    %1 = arith.cmpi eq, %arg1, %c0_i32_0 : i32
    %2 = arith.andi %0, %1 : i1
    %3 = arith.extui %2 : i1 to i32
    %c0_i32_1 = arith.constant 0 : i32
    %4 = arith.cmpi ne, %3, %c0_i32_1 : i32
    scf.if %4 {
      %c0_31 = arith.constant 0 : index
      %c0_32 = arith.constant 0 : index
      %56 = vector.load %arg2[%c0_31, %c0_32] : memref<256x128xbf16, #tpu.memory_space<vmem>>, vector<256x128xbf16>
      %c0_33 = arith.constant 0 : index
      %c0_34 = arith.constant 0 : index
      %c0_35 = arith.constant 0 : index
      %57 = vector.load %arg14[%c0_33, %c0_34, %c0_35] : memref<2x256x128xbf16, #tpu.memory_space<vmem>>, vector<1x256x128xbf16>
      %58 = vector.shape_cast %57 : vector<1x256x128xbf16> to vector<256x128xbf16>
      %59 = vector.shape_cast %56 : vector<256x128xbf16> to vector<1x256x128xbf16>
      tpu.vector_store %arg14[%c0_33, %c0_34, %c0_35], %59 {strides = array<i32>} : memref<2x256x128xbf16, #tpu.memory_space<vmem>>, vector<1x256x128xbf16>,
      %cst_36 = arith.constant 0.000000e+00 : f32
      %60 = vector.broadcast %cst_36 : f32 to vector<8x128xf32>
      %c0_37 = arith.constant 0 : index
      %c0_38 = arith.constant 0 : index
      %61 = vector.load %arg15[%c0_37, %c0_38] : memref<8x128xf32, #tpu.memory_space<vmem>>, vector<8x128xf32>
      tpu.vector_store %arg15[%c0_37, %c0_38], %60 {strides = array<i32>} : memref<8x128xf32, #tpu.memory_space<vmem>>, vector<8x128xf32>,
    } else {
    }
    %c2_i32 = arith.constant 2 : i32
    %c0_i32_2 = arith.constant 0 : i32
    %5 = arith.cmpi eq, %c2_i32, %c0_i32_2 : i32
    %c1_i32 = arith.constant 1 : i32
    %6 = arith.select %5, %c1_i32, %c2_i32 : i32
    %7 = arith.remsi %arg0, %6 : i32
    %c0_i32_3 = arith.constant 0 : i32
    %8 = arith.cmpi ne, %7, %c0_i32_3 : i32
    %c0_i32_4 = arith.constant 0 : i32
    %9 = arith.cmpi slt, %7, %c0_i32_4 : i32
    %c0_i32_5 = arith.constant 0 : i32
    %10 = arith.cmpi slt, %6, %c0_i32_5 : i32
    %11 = arith.xori %9, %10 : i1
    %12 = arith.andi %11, %8 : i1
    %13 = arith.addi %7, %6 : i32
    %14 = arith.select %12, %13, %7 : i32
    %c1_i32_6 = arith.constant 1 : i32
    %15 = arith.subi %c1_i32_6, %14 : i32
    %16 = arith.index_cast %14 : i32 to index
    %c0 = arith.constant 0 : index
    %c0_7 = arith.constant 0 : index
    %17 = vector.load %arg14[%16, %c0, %c0_7] : memref<2x256x128xbf16, #tpu.memory_space<vmem>>, vector<1x256x128xbf16>
    %18 = vector.shape_cast %17 : vector<1x256x128xbf16> to vector<256x128xbf16>
    %c0_8 = arith.constant 0 : index
    %c0_9 = arith.constant 0 : index
    %19 = vector.load %arg3[%c0_8, %c0_9] : memref<128x256xbf16, #tpu.memory_space<vmem>>, vector<128x256xbf16>
    %cst = arith.constant dense<0.000000e+00> : vector<128x128xf32>
    %20 = tpu.matmul %19, %18, %cst {dimension_numbers = #tpu.dot_dimension_numbers<[1], [0], [0], [1], [0, 0, 1, 1], [], []>} : vector<128x256xbf16>, vector<256x128xbf16>, vector<128x128xf32> -> vector<128x128xf32>
    %21 = arith.truncf %20 : vector<128x128xf32> to vector<128x128xbf16>
    %c0_10 = arith.constant 0 : index
    %c0_11 = arith.constant 0 : index
    %c0_12 = arith.constant 0 : index
    %22 = vector.load %arg4[%c0_10, %c0_11, %c0_12] : memref<1x128x128xbf16, #tpu.memory_space<vmem>>, vector<1x128x128xbf16>
    %23 = vector.shape_cast %22 : vector<1x128x128xbf16> to vector<128x128xbf16>
    %cst_13 = arith.constant dense<0.000000e+00> : vector<128x128xf32>
    %24 = tpu.matmul %21, %23, %cst_13 {dimension_numbers = #tpu.dot_dimension_numbers<[1], [0], [0], [1], [0, 0, 1, 1], [], []>} : vector<128x128xbf16>, vector<128x128xbf16>, vector<128x128xf32> -> vector<128x128xf32>
    %c0_14 = arith.constant 0 : index
    %c0_15 = arith.constant 0 : index
    %c0_16 = arith.constant 0 : index
    %25 = vector.load %arg5[%c0_14, %c0_15, %c0_16] : memref<1x1x128xf32, #tpu.memory_space<vmem>>, vector<1x1x128xf32>
    %26 = vector.shape_cast %25 : vector<1x1x128xf32> to vector<1x128xf32>
    %27 = vector.broadcast %26 : vector<1x128xf32> to vector<128x128xf32>
    %28 = arith.addf %24, %27 : vector<128x128xf32>
    %cst_17 = arith.constant 0.000000e+00 : f32
    %29 = vector.broadcast %cst_17 : f32 to vector<128x128xf32>
    %30 = arith.maximumf %28, %29 : vector<128x128xf32>
    %31 = arith.truncf %30 : vector<128x128xf32> to vector<128x128xbf16>
    %c0_18 = arith.constant 0 : index
    %c0_19 = arith.constant 0 : index
    %c0_20 = arith.constant 0 : index
    %32 = vector.load %arg6[%c0_18, %c0_19, %c0_20] : memref<1x128x128xbf16, #tpu.memory_space<vmem>>, vector<1x128x128xbf16>
    %33 = vector.shape_cast %32 : vector<1x128x128xbf16> to vector<128x128xbf16>
    %cst_21 = arith.constant dense<0.000000e+00> : vector<128x128xf32>
    %34 = tpu.matmul %31, %33, %cst_21 {dimension_numbers = #tpu.dot_dimension_numbers<[1], [0], [0], [1], [0, 0, 1, 1], [], []>} : vector<128x128xbf16>, vector<128x128xbf16>, vector<128x128xf32> -> vector<128x128xf32>
    %c0_22 = arith.constant 0 : index
    %c0_23 = arith.constant 0 : index
    %c0_24 = arith.constant 0 : index
    %35 = vector.load %arg7[%c0_22, %c0_23, %c0_24] : memref<1x1x128xf32, #tpu.memory_space<vmem>>, vector<1x1x128xf32>
    %36 = vector.shape_cast %35 : vector<1x1x128xf32> to vector<1x128xf32>
    %37 = vector.broadcast %36 : vector<1x128xf32> to vector<128x128xf32>
    %38 = arith.addf %34, %37 : vector<128x128xf32>
    %cst_25 = arith.constant 0.000000e+00 : f32
    %39 = vector.broadcast %cst_25 : f32 to vector<128x128xf32>
    %40 = arith.maximumf %38, %39 : vector<128x128xf32>
    %41 = arith.truncf %40 : vector<128x128xf32> to vector<128x128xbf16>
    %c128_i32 = arith.constant 128 : i32
    %42 = arith.muli %arg1, %c128_i32 : i32
    %43 = tpu.assume_multiple %42, 128 : i32
    %44 = arith.index_cast %15 : i32 to index
    %45 = arith.index_cast %43 : i32 to index
    %c0_26 = arith.constant 0 : index
    %46 = vector.load %arg14[%44, %45, %c0_26] : memref<2x256x128xbf16, #tpu.memory_space<vmem>>, vector<1x128x128xbf16>
    %47 = vector.shape_cast %46 : vector<1x128x128xbf16> to vector<128x128xbf16>
    %48 = vector.shape_cast %41 : vector<128x128xbf16> to vector<1x128x128xbf16>
    tpu.vector_store %arg14[%44, %45, %c0_26], %48 {strides = array<i32>} : memref<2x256x128xbf16, #tpu.memory_space<vmem>>, vector<1x128x128xbf16>,
    %c1_i32_27 = arith.constant 1 : i32
    %49 = arith.cmpi eq, %arg0, %c1_i32_27 : i32
    %50 = arith.extui %49 : i1 to i32
    %c0_i32_28 = arith.constant 0 : i32
    %51 = arith.cmpi ne, %50, %c0_i32_28 : i32
    scf.if %51 {
      %c0_31 = arith.constant 0 : index
      %c0_32 = arith.constant 0 : index
      %56 = vector.load %arg15[%c0_31, %c0_32] : memref<8x128xf32, #tpu.memory_space<vmem>>, vector<8x128xf32>
      %c0_33 = arith.constant 0 : index
      %c0_34 = arith.constant 0 : index
      %57 = vector.load %arg8[%c0_33, %c0_34] : memref<8x128xf32, #tpu.memory_space<vmem>>, vector<8x128xf32>
      %58 = arith.truncf %57 : vector<8x128xf32> to vector<8x128xbf16>
      %cst_35 = arith.constant dense<0.000000e+00> : vector<8x128xf32>
      %59 = tpu.matmul %58, %41, %cst_35 {dimension_numbers = #tpu.dot_dimension_numbers<[1], [0], [0], [1], [0, 0, 1, 1], [], []>} : vector<8x128xbf16>, vector<128x128xbf16>, vector<8x128xf32> -> vector<8x128xf32>
      %60 = arith.addf %56, %59 : vector<8x128xf32>
      %c0_36 = arith.constant 0 : index
      %c0_37 = arith.constant 0 : index
      %61 = vector.load %arg15[%c0_36, %c0_37] : memref<8x128xf32, #tpu.memory_space<vmem>>, vector<8x128xf32>
      tpu.vector_store %arg15[%c0_36, %c0_37], %60 {strides = array<i32>} : memref<8x128xf32, #tpu.memory_space<vmem>>, vector<8x128xf32>,
    } else {
    }
    %c1_i32_29 = arith.constant 1 : i32
    %52 = arith.cmpi eq, %arg1, %c1_i32_29 : i32
    %53 = arith.andi %49, %52 : i1
    %54 = arith.extui %53 : i1 to i32
    %c0_i32_30 = arith.constant 0 : i32
    %55 = arith.cmpi ne, %54, %c0_i32_30 : i32
    scf.if %55 {
      %c0_31 = arith.constant 0 : index
      %c0_32 = arith.constant 0 : index
      %56 = vector.load %arg15[%c0_31, %c0_32] : memref<8x128xf32, #tpu.memory_space<vmem>>, vector<8x128xf32>
      %57 = arith.truncf %56 : vector<8x128xf32> to vector<8x128xbf16>
      %c0_33 = arith.constant 0 : index
      %c0_34 = arith.constant 0 : index
      %58 = vector.load %arg9[%c0_33, %c0_34] : memref<128x128xbf16, #tpu.memory_space<vmem>>, vector<128x128xbf16>
      %cst_35 = arith.constant dense<0.000000e+00> : vector<8x128xf32>
      %59 = tpu.matmul %57, %58, %cst_35 {dimension_numbers = #tpu.dot_dimension_numbers<[1], [0], [0], [1], [0, 0, 1, 1], [], []>} : vector<8x128xbf16>, vector<128x128xbf16>, vector<8x128xf32> -> vector<8x128xf32>
      %c0_36 = arith.constant 0 : index
      %c0_37 = arith.constant 0 : index
      %60 = vector.load %arg10[%c0_36, %c0_37] : memref<1x128xf32, #tpu.memory_space<vmem>>, vector<1x128xf32>
      %61 = vector.broadcast %60 : vector<1x128xf32> to vector<8x128xf32>
      %62 = arith.addf %59, %61 : vector<8x128xf32>
      %cst_38 = arith.constant 0.000000e+00 : f32
      %63 = vector.broadcast %cst_38 : f32 to vector<8x128xf32>
      %64 = arith.maximumf %62, %63 : vector<8x128xf32>
      %65 = arith.truncf %64 : vector<8x128xf32> to vector<8x128xbf16>
      %c0_39 = arith.constant 0 : index
      %c0_40 = arith.constant 0 : index
      %66 = vector.load %arg11[%c0_39, %c0_40] : memref<128x128xbf16, #tpu.memory_space<vmem>>, vector<128x128xbf16>
      %cst_41 = arith.constant dense<0.000000e+00> : vector<8x128xf32>
      %67 = tpu.matmul %65, %66, %cst_41 {dimension_numbers = #tpu.dot_dimension_numbers<[1], [0], [0], [1], [0, 0, 1, 1], [], []>} : vector<8x128xbf16>, vector<128x128xbf16>, vector<8x128xf32> -> vector<8x128xf32>
      %c0_42 = arith.constant 0 : index
      %c0_43 = arith.constant 0 : index
      %68 = vector.load %arg12[%c0_42, %c0_43] : memref<1x128xf32, #tpu.memory_space<vmem>>, vector<1x128xf32>
      %69 = vector.broadcast %68 : vector<1x128xf32> to vector<8x128xf32>
      %70 = arith.addf %67, %69 : vector<8x128xf32>
      %c0_44 = arith.constant 0 : index
      %c0_45 = arith.constant 0 : index
      %71 = vector.load %arg13[%c0_44, %c0_45] : memref<8x128xf32, #tpu.memory_space<vmem>>, vector<8x128xf32>
      tpu.vector_store %arg13[%c0_44, %c0_45], %70 {strides = array<i32>} : memref<8x128xf32, #tpu.memory_space<vmem>>, vector<8x128xf32>,
    } else {
    }
    return
  }
  func.func @transform_0(%arg0: i32, %arg1: i32) -> (i32, i32) {
    %c0_i32 = arith.constant 0 : i32
    %c0_i32_0 = arith.constant 0 : i32
    %c0_i32_1 = arith.constant 0 : i32
    return %c0_i32, %c0_i32_0 : i32, i32
  }
  func.func @transform_1(%arg0: i32, %arg1: i32) -> (i32, i32) {
    %c0_i32 = arith.constant 0 : i32
    %c0_i32_0 = arith.constant 0 : i32
    return %arg1, %c0_i32 : i32, i32
  }
  func.func @transform_2(%arg0: i32, %arg1: i32) -> (i32, i32, i32) {
    %c0_i32 = arith.constant 0 : i32
    %c0_i32_0 = arith.constant 0 : i32
    %c0_i32_1 = arith.constant 0 : i32
    return %arg0, %c0_i32, %c0_i32_0 : i32, i32, i32
  }
  func.func @transform_3(%arg0: i32, %arg1: i32) -> (i32, i32, i32) {
    %c0_i32 = arith.constant 0 : i32
    %c0_i32_0 = arith.constant 0 : i32
    %c0_i32_1 = arith.constant 0 : i32
    return %arg0, %c0_i32, %c0_i32_0 : i32, i32, i32
  }
  func.func @transform_4(%arg0: i32, %arg1: i32) -> (i32, i32, i32) {
    %c0_i32 = arith.constant 0 : i32
    %c0_i32_0 = arith.constant 0 : i32
    %c0_i32_1 = arith.constant 0 : i32
    return %arg0, %c0_i32, %c0_i32_0 : i32, i32, i32
  }
  func.func @transform_5(%arg0: i32, %arg1: i32) -> (i32, i32, i32) {
    %c0_i32 = arith.constant 0 : i32
    %c0_i32_0 = arith.constant 0 : i32
    %c0_i32_1 = arith.constant 0 : i32
    return %arg0, %c0_i32, %c0_i32_0 : i32, i32, i32
  }
  func.func @transform_6(%arg0: i32, %arg1: i32) -> (i32, i32) {
    %c0_i32 = arith.constant 0 : i32
    %c0_i32_0 = arith.constant 0 : i32
    return %c0_i32, %arg1 : i32, i32
  }
  func.func @transform_7(%arg0: i32, %arg1: i32) -> (i32, i32) {
    %c0_i32 = arith.constant 0 : i32
    %c0_i32_0 = arith.constant 0 : i32
    %c0_i32_1 = arith.constant 0 : i32
    return %c0_i32, %c0_i32_0 : i32, i32
  }
  func.func @transform_8(%arg0: i32, %arg1: i32) -> (i32, i32) {
    %c0_i32 = arith.constant 0 : i32
    %c0_i32_0 = arith.constant 0 : i32
    %c0_i32_1 = arith.constant 0 : i32
    return %c0_i32, %c0_i32_0 : i32, i32
  }
  func.func @transform_9(%arg0: i32, %arg1: i32) -> (i32, i32) {
    %c0_i32 = arith.constant 0 : i32
    %c0_i32_0 = arith.constant 0 : i32
    %c0_i32_1 = arith.constant 0 : i32
    return %c0_i32, %c0_i32_0 : i32, i32
  }
  func.func @transform_10(%arg0: i32, %arg1: i32) -> (i32, i32) {
    %c0_i32 = arith.constant 0 : i32
    %c0_i32_0 = arith.constant 0 : i32
    %c0_i32_1 = arith.constant 0 : i32
    return %c0_i32, %c0_i32_0 : i32, i32
  }
  func.func @transform_11(%arg0: i32, %arg1: i32) -> (i32, i32) {
    %c0_i32 = arith.constant 0 : i32
    %c0_i32_0 = arith.constant 0 : i32
    %c0_i32_1 = arith.constant 0 : i32
    return %c0_i32, %c0_i32_0 : i32, i32
  }
}

</mosaic_0001>

<bundles_post_ra>
// kernel: tpu_custom_call.1
= control target key start
LH: loop header
LB: loop body
LE: loop exit
PB: predicated region body
PF: predicated region fallthrough
CT: control target
= control target key end

     0   :  { %s3247_s0 = inlined_call_operand.hbm [shape: bf16[256,128], index: 0, kind: input, shape index: {}]   ;;  %s3248_s1 = inlined_call_operand.hbm [shape: bf16[256,256], index: 1, kind: input, shape index: {}]   ;;  %s3249_s2 = inlined_call_operand.hbm [shape: bf16[2,128,128], index: 2, kind: input, shape index: {}]   ;;  %s3250_s3 = inlined_call_operand.vmem [shape: f32[2,1,128], index: 3, kind: input, shape index: {}]   ;;  %s3251_s4 = inlined_call_operand.hbm [shape: bf16[2,128,128], index: 4, kind: input, shape index: {}]   ;;  %s3252_s5 = inlined_call_operand.vmem [shape: f32[2,1,128], index: 5, kind: input, shape index: {}]   ;;  %s3253_s6 = inlined_call_operand.hbm [shape: f32[8,256], index: 6, kind: input, shape index: {}]   ;;  %s3254_s7 = inlined_call_operand.hbm [shape: bf16[128,128], index: 7, kind: input, shape index: {}]   ;;  %s3255_s8 = inlined_call_operand.vmem [shape: f32[1,128], index: 8, kind: input, shape index: {}]   ;;  %s3256_s9 = inlined_call_operand.hbm [shape: bf16[128,128], index: 9, kind: input, shape index: {}]   ;;  %s3257_s10 = inlined_call_operand.vmem [shape: f32[1,128], index: 10, kind: input, shape index: {}]   ;;  %s3258_s11 = inlined_call_operand.hbm [shape: f32[8,128], index: 11, kind: output, shape index: {}]  }
   0x1   :  { %3272 = sst [smem:[#allocation33_spill]] %s3248_s1 }
   0x2   :  { %3273 = sst [smem:[#allocation34_spill]] %s3249_s2 }
   0x3   :  { %3274 = sst [smem:[#allocation35_spill]] %s3250_s3 }
   0x4   :  { %3275 = sst [smem:[#allocation36_spill]] %s3251_s4 }
   0x5   :  { %3276 = sst [smem:[#allocation37_spill]] %s3252_s5 }
   0x6   :  { %3277 = sst [smem:[#allocation38_spill]] %s3254_s7 }
   0x7   :  { %3278 = sst [smem:[#allocation39_spill]] %s3255_s8 }
   0x8   :  { %3279 = sst [smem:[#allocation40_spill]] %s3257_s10 }
   0x9   :  { %3280 = sst [smem:[#allocation41_spill]] %s3258_s11 }
   0xa   :  { %16 = vsyncpa [#allocation5], 0 }
   0xb   :  { %17 = vsyncpa [#allocation8], 0 }
   0xc   :  { %19 = vsyncpa [#allocation8 + $0x1], 0 }
   0xd   :  { %20 = vsyncpa [#allocation11], 0 }
   0xe   :  { %22 = vsyncpa [#allocation11 + $0x1], 0 }
   0xf   :  { %23 = vsyncpa [#allocation14], 0 }
  0x10   :  { %24 = vsyncpa [#allocation6], 0  ;;  %s2756_s17 = smov 0   ;;  %s2758_s18 = smov 0  }
  0x11   :  { %s2760_s19 = smov 0   ;;  %s2762_s20 = smov 0  }
  0x12   :  { %s2764_s21 = smov 0   ;;  %s2766_s22 = smov 0  }
  0x13   :  { %s2768_s23 = smov 0   ;;  %s2770_s24 = smov 0  }
  0x14   :  { %s2772_s25 = smov 0   ;;  %s2774_s26 = smov 0  }
  0x15   :  { %s2776_s27 = smov 0  }
  0x16 LB: > { %3281 = sst [smem:[#allocation24_spill]] %s2649_s18  ;;  %s2812_s28 = sadd.s32 4294967295, %s2685_s27   ;;  %s2685_s27 = sphi %s2776_s27, %s30_s27   ;;  %s2681_s26 = sphi %s2774_s26, %s3328_s26   ;;  %s2677_s25 = sphi %s2772_s25, %s3335_s25   ;;  %s2673_s24 = sphi %s2770_s24, %s3326_s24   ;;  %s2669_s23 = sphi %s2768_s23, %s3334_s23   ;;  %s2665_s22 = sphi %s2766_s22, %s3333_s22   ;;  %s2661_s21 = sphi %s2764_s21, %s3332_s21   ;;  %s2657_s20 = sphi %s2762_s20, %s3331_s20   ;;  %s2653_s19 = sphi %s2760_s19, %s3330_s19   ;;  %s2649_s18 = sphi %s2758_s18, %s3329_s18   ;;  %s2645_s17 = sphi %s2756_s17, %s3323_s17  }
  0x17   : > { %3282 = sst [smem:[#allocation25_spill]] %s2669_s23  ;;  %p1766_p0 = scmp.ge.s32.totalorder %s2685_s27, 1 }
  0x18   : > { %3283 = sst [smem:[#allocation26_spill]] %s2673_s24  ;;  %p84_p1 = scmp.eq.s32.totalorder %s2812_s28, 0 }
  0x19   : > { %3284 = sst [smem:[#allocation27_spill]] %s2681_s26  ;;  %p329_p2 = scmp.lt.s32.totalorder %s2685_s27, 5 }
  0x1a   : > { %s3285_s7 = sld [smem:[#allocation38_spill]]  ;;  %s2687_s14 = smov [#allocation13]  }
  0x1b   : > { %p2820_p3 = pnand %p1766_p0, %p329_p2  ;;  %s356_s15 = sshll.u32 %s2687_s14, 4  ;;  %s357_s15 = int_to_ptr.vmem [resolvable:$true] %s356_s15 }
  0x1c   : > { %s3259_s29 = smov 64   ;;  %s3261_s30 = smov 4  }
  0x1d   : > { %p2200_p4 = pneg %p2820_p3  ;;  %s39_s14 = sadd.s32 1, %s2677_s25 }
  0x1e   : > { %p2838_p6 = scmp.ge.s32.totalorder %s39_s14, 2  ;;  %s70_s11 = sadd.s32 1, %s2665_s22 }
  0x1f   : > { %p2828_p5 = pnand %p2200_p4, %p84_p1  ;;  %p77_p7 = scmp.ne.s32.totalorder %s2665_s22, %s2661_s21 }
  0x20   : > { %s354_s12 = sshll.u32 %s3285_s7, 4  ;;  %p78_p8 = scmp.eq.s32.totalorder %s2685_s27, 0  ;;  %s355_s12 = int_to_ptr.hbm [resolvable:$true] %s354_s12 }
  0x21   : > { %2206 = dma.hbm_to_vmem [thread:$0]  (!%p2828_p5), %s355_s12, 1024, %s357_s15, [#allocation14], %s3259_s29, %s3259_s29, %s3261_s30  }
  0x22   : > { %s3337_s14 = smov (%p2838_p6, %s39_s14), 0  ;;  %p2852_p9 = por %p78_p8, %p77_p7 }
  0x23   : > { %3289 = sst [smem:[#allocation28_spill]] %s3337_s14  ;;  %p83_p10 = scmp.ne.s32.totalorder %s2661_s21, %s2657_s20 }
  0x24   : > { %s67_s12 = ssub.s32 %s2677_s25, %s3337_s14  ;;  %p2226_p11 = scmp.lt.s32.totalorder %s2685_s27, 4 }
  0x25   : > { %p68_p12 = scmp.eq.s32.totalorder %s67_s12, 0  ;;  %p2863_p13 = por %p84_p1, %p83_p10 }
  0x26   : > { %s3266_s30 = sand.u32 1, %s2665_s22   ;;  %s2061_s14 = sshll.u32 %s2677_s25, 7 }
  0x27   : > { %s3291_s15 = scalar_select %p2863_p13, 1, 0 }
  0x28   : > { %s2870_s8 = scalar_select %p68_p12, %s2665_s22, %s70_s11  }
  0x29   : > { %3292 = sst [smem:[#allocation29_spill]] %s3291_s15  ;;  %s1771_s20 = sshll.u32 %s3266_s30, 7 }
  0x2a   : > { %3293 = sst [smem:[#allocation30_spill]] %s2870_s8  ;;  %s394_s23 = scalar_lea.vmem [#allocation7], %s1771_s20 }
  0x2b   : > { %s3294_s1 = sld [smem:[#allocation33_spill]]  ;;  %s403_s29 = sshll.u32 %s394_s23, 4  ;;  %s404_s29 = int_to_ptr.vmem [resolvable:$true] %s403_s29 }
  0x2c   : > { %p2882_p0 = pnand %p2226_p11, %p2852_p9  ;;  %s3296_s30 = sand.u32 1, %s2685_s27  }
  0x2d   : > { %s2888_s5 = scalar_lea.sflag [#allocation8], %s3296_s30  ;;  %s2691_s23 = smov 8  }
  0x2e   : > { %s96_s10 = sadd.s32 1, %s2653_s19  ;;  %p103_p2 = scmp.ne.s32.totalorder %s2653_s19, %s2649_s18 }
  0x2f   : > { %p109_p7 = scmp.ne.s32.totalorder %s2649_s18, %s2645_s17  ;;  %s415_s30 = sand.u32 1, %s2653_s19  }
  0x30   : > { %p2904_p9 = por %p103_p2, %p78_p8  ;;  %s2062_s17 = sshll.u32 %s2681_s26, 6 }
  0x31   : > { %s400_s3 = scalar_lea.hbm %s3294_s1, %s2061_s14  ;;  %s2690_s14 = smov 128  }
  0x32   : > { %s401_s24 = sshll.u32 %s400_s3, 4  ;;  %s42_s3 = sadd.s32 1, %s2681_s26  ;;  %s402_s24 = int_to_ptr.hbm [resolvable:$true] %s401_s24 }
  0x33   : > { %2213 = dma.hbm_to_vmem [thread:$0]  (!%p2882_p0), %s402_s24, 2048, %s404_s29, %s2888_s5, %s2690_s14, %s2690_s14, %s2691_s23  }
  0x34   : > { %s3339_s3 = smov (!%p2838_p6, %s42_s3), %s2681_s26  ;;  %p2913_p10 = por %p109_p7, %p84_p1 }
  0x35   : > { %p44_p4 = scmp.ge.s32.totalorder %s3339_s3, 2  ;;  %s1775_s24 = sshll.u32 %s415_s30, 6 }
  0x36   : > { %s3300_s2 = sld [smem:[#allocation34_spill]]  ;;  %s417_s1 = scalar_lea.vmem [#allocation9], %s1775_s24 }
  0x37   : > { %s3341_s3 = smov (%p44_p4, %s3339_s3), 0  ;;  %s2923_s8 = sshll.u32 %s417_s1, 4  ;;  %s426_s8 = int_to_ptr.vmem [resolvable:$true] %s2923_s8 }
  0x38   : > { %3298 = sst [smem:[#allocation31_spill]] %s3341_s3  ;;  %s93_s29 = ssub.s32 %s2681_s26, %s3341_s3 }
  0x39   : > { %p94_p6 = scmp.eq.s32.totalorder %s93_s29, 0  ;;  %p2933_p8 = pnand %p2226_p11, %p2904_p9 }
  0x3a   : > { %s3303_s4 = sld [smem:[#allocation36_spill]]  ;;  %s445_s14 = scalar_lea.vmem [#allocation10], %s1775_s24 }
  0x3b   : > { %s2926_s18 = scalar_select %p94_p6, %s2653_s19, %s96_s10  }
  0x3c   : > { %s422_s23 = scalar_lea.hbm %s3300_s2, %s2062_s17  ;;  %s453_s10 = sshll.u32 %s445_s14, 4  ;;  %s454_s10 = int_to_ptr.vmem [resolvable:$true] %s453_s10 }
  0x3d   : > { %3301 = sst [smem:[#allocation32_spill]] %s2926_s18  ;;  %s423_s15 = sshll.u32 %s422_s23, 4  ;;  %s424_s15 = int_to_ptr.hbm [resolvable:$true] %s423_s15 }
  0x3e   : > { %s3304_s23 = sand.u32 1, %s2685_s27   ;;  %s3305_s2 = smov 4  }
  0x3f   : > { %s442_s20 = scalar_lea.sflag [#allocation11], %s3304_s23  ;;  %s3306_s26 = smov 64  }
  0x40   : > { %s450_s12 = scalar_lea.hbm %s3303_s4, %s2062_s17  ;;  %s340_s17 = sshll.u32 %s3247_s0, 4  ;;  %s341_s17 = int_to_ptr.hbm [resolvable:$true] %s340_s17 }
  0x41   : > { %s451_s1 = sshll.u32 %s450_s12, 4  ;;  %s2692_s24 = smov [#allocation4]   ;;  %s452_s1 = int_to_ptr.hbm [resolvable:$true] %s451_s1 }
  0x42   : > { %2219 = dma.hbm_to_vmem [thread:$0]  (!%p2933_p8), %s452_s1, 1024, %s454_s10, %s442_s20, %s3306_s26, %s3306_s26, %s3305_s2  }
  0x43   : > { %s342_s12 = sshll.u32 %s2692_s24, 4  ;;  %s371_s18 = sshll.u32 %s3256_s9, 4  ;;  %s343_s12 = int_to_ptr.vmem [resolvable:$true] %s342_s12  ;;  %s372_s18 = int_to_ptr.hbm [resolvable:$true] %s371_s18 }
  0x44   : > { %2203 = dma.hbm_to_vmem [thread:$0]  (!%p2828_p5), %s341_s17, 2048, %s343_s12, [#allocation5], %s3306_s26, %s3306_s26, %s3305_s2  }
  0x45   : > { %s2693_s1 = smov [#allocation15]   ;;  %s3307_s23 = sand.u32 1, %s2665_s22  }
  0x46   : > { %s373_s10 = sshll.u32 %s2693_s1, 4  ;;  %s1781_s3 = sshll.u32 %s3307_s23, 3  ;;  %s374_s10 = int_to_ptr.vmem [resolvable:$true] %s373_s10 }
  0x47   : > { %2209 = dma.hbm_to_vmem [thread:$0]  (!%p2828_p5), %s372_s18, 1024, %s374_s10, [#allocation14], %s3306_s26, %s3306_s26, %s3305_s2  }
  0x48   : > { %2216 = dma.hbm_to_vmem [thread:$0]  (!%p2933_p8), %s424_s15, 1024, %s426_s8, %s2888_s5, %s3306_s26, %s3306_s26, %s3305_s2  }
  0x49   : > { %s1782_s4 = sshll.u32 %s2677_s25, 3  ;;  %s473_s29 = scalar_lea.vmem [#allocation12], %s1781_s3 }
  0x4a   : > { %s481_s24 = sshll.u32 %s473_s29, 4  ;;  %s477_s14 = scalar_lea.hbm %s3253_s6, %s1782_s4  ;;  %s482_s24 = int_to_ptr.vmem [resolvable:$true] %s481_s24 }
  0x4b   : > { %s479_s1 = sshll.u32 %s477_s14, 4  ;;  %490 = sbr.rel (%p2820_p3) target bundleno = 1220 (0x4c4), region = 64  ;;  %s480_s1 = int_to_ptr.hbm [resolvable:$true] %s479_s1 }
  0x4c   : > { %2222 = dma.hbm_to_vmem [thread:$0]  (!%p2882_p0), %s480_s1, 128, %s482_s24, %s442_s20  }
  0x50   : > { %2616 = dma.done.wait (%p84_p1), [#allocation5], 2048  }
  0x51   : > { %2618 = vsyncadd (%p84_p1), [#allocation5], 4294965248  ;;  %s497_s8 = sand.u32 1, %s2812_s28   ;;  %s499_s18 = sand.u32 1, %s2661_s21  }
  0x52   : > { %s1785_s26 = sshll.u32 %s499_s18, 7  ;;  %s498_s16 = scalar_lea.sflag [#allocation8], %s497_s8 }
  0x53   : > { %s2985_s15 = scalar_lea.vmem [#allocation7], %s1785_s26 }
  0x54   : > { %2620 = dma.done.wait (%p2863_p13), %s498_s16, 2048  }
  0x55   : > { %2622 = vsyncadd (%p2863_p13), %s498_s16, 4294965248  ;;  %s3309_s13 = sld [smem:[#allocation24_spill]] }
  0x5b   : > { %s509_s11 = sand.u32 1, %s3309_s13  }
  0x5c   : > { %s1786_s5 = sshll.u32 %s509_s11, 6 }
  0x5d   : > { %s2992_s30 = scalar_lea.vmem [#allocation9], %s1786_s5 }
  0x5e   : > { %2624 = dma.done.wait (%p2913_p10), %s498_s16, 1024  }
  0x5f   : > { %2626 = vsyncadd (%p2913_p10), %s498_s16, 4294966272  ;;  %s518_s20 = scalar_lea.sflag [#allocation11], %s497_s8  ;;  %s2998_s10 = scalar_lea.vmem [#allocation10], %s1786_s5 }
  0x60   : > { %2628 = dma.done.wait (%p2913_p10), %s518_s20, 1024  }
  0x61   : > { %2630 = vsyncadd (%p2913_p10), %s518_s20, 4294966272  ;;  %s3004_s23 = sshll.u32 %s499_s18, 3 }
  0x62   : > { %s531_s3 = scalar_lea.vmem [#allocation12], %s3004_s23 }
  0x63   : > { %2632 = dma.done.wait (%p2863_p13), %s518_s20, 128  }
  0x64   : > { %2634 = vsyncadd (%p2863_p13), %s518_s20, 4294967168 }
  0x65   : > { %2636 = dma.done.wait (%p84_p1), [#allocation14], 2048  }
  0x66   : > { %2638 = vsyncadd (%p84_p1), [#allocation14], 4294965248  ;;  %s3310_s4 = sld [smem:[#allocation26_spill]] }
  0x67   : > { %s3311_s7 = sld [smem:[#allocation25_spill]] }
  0x68   : > { %s3312_s17 = sld [smem:[#allocation35_spill]] }
  0x69   : > { %s3313_s2 = sld [smem:[#allocation37_spill]] }
  0x6c   : > { %p598_p3 = scmp.lt.s32.totalorder %s3310_s4, 1  ;;  %p604_p5 = scmp.eq.s32.totalorder %s3310_s4, 0 }
  0x6d   : > { %p605_p11 = scmp.eq.s32.totalorder %s3311_s7, 0 }
  0x6e   : > { %s3343_s4 = smov (!%p598_p3, %s3310_s4), 1 }
  0x6f   : > { %p606_p12 = pnand %p605_p11, %p604_p5  ;;  %s600_s12 = scalar_lea.vmem %s3312_s17, %s3343_s4 }
  0x70   : > { %s603_s8 = scalar_lea.vmem %s3313_s2, %s3343_s4 }
  0x71   : > { %609 = sbr.rel (%p606_p12) target bundleno = 136 (0x88), region = 96 }
  0x76   : > { %v610_v0 = vld [vmem:[#allocation4] sm:$0xff]   ;;  %v612_v1 = vld [vmem:[#allocation4 + $0x8] sm:$0xff]   ;;  %v614_v2 = vld [vmem:[#allocation4 + $0x10] sm:$0xff]   ;;  %v2694_v16 = vmov 0.0  }
  0x77   : > { %642 = vst [vmem:[#allocation2] sm:$0xff] %v610_v0   ;;  %v616_v3 = vld [vmem:[#allocation4 + $0x18] sm:$0xff]   ;;  %v618_v4 = vld [vmem:[#allocation4 + $0x20] sm:$0xff]   ;;  %v620_v5 = vld [vmem:[#allocation4 + $0x28] sm:$0xff]  }
  0x78   : > { %644 = vst [vmem:[#allocation2 + $0x8] sm:$0xff] %v612_v1   ;;  %v622_v6 = vld [vmem:[#allocation4 + $0x30] sm:$0xff]   ;;  %v624_v7 = vld [vmem:[#allocation4 + $0x38] sm:$0xff]   ;;  %v626_v8 = vld [vmem:[#allocation4 + $0x40] sm:$0xff]  }
  0x79   : > { %646 = vst [vmem:[#allocation2 + $0x10] sm:$0xff] %v614_v2   ;;  %v628_v9 = vld [vmem:[#allocation4 + $0x48] sm:$0xff]   ;;  %v630_v10 = vld [vmem:[#allocation4 + $0x50] sm:$0xff]   ;;  %v632_v11 = vld [vmem:[#allocation4 + $0x58] sm:$0xff]  }
  0x7a   : > { %648 = vst [vmem:[#allocation2 + $0x18] sm:$0xff] %v616_v3   ;;  %v634_v12 = vld [vmem:[#allocation4 + $0x60] sm:$0xff]   ;;  %v636_v13 = vld [vmem:[#allocation4 + $0x68] sm:$0xff]   ;;  %v638_v14 = vld [vmem:[#allocation4 + $0x70] sm:$0xff]  }
  0x7b   : > { %650 = vst [vmem:[#allocation2 + $0x20] sm:$0xff] %v618_v4   ;;  %v640_v15 = vld [vmem:[#allocation4 + $0x78] sm:$0xff]  }
  0x7c   : > { %652 = vst [vmem:[#allocation2 + $0x28] sm:$0xff] %v620_v5  }
  0x7d   : > { %654 = vst [vmem:[#allocation2 + $0x30] sm:$0xff] %v622_v6  }
  0x7e   : > { %656 = vst [vmem:[#allocation2 + $0x38] sm:$0xff] %v624_v7  }
  0x7f   : > { %658 = vst [vmem:[#allocation2 + $0x40] sm:$0xff] %v626_v8  }
  0x80   : > { %660 = vst [vmem:[#allocation2 + $0x48] sm:$0xff] %v628_v9  }
  0x81   : > { %662 = vst [vmem:[#allocation2 + $0x50] sm:$0xff] %v630_v10  }
  0x82   : > { %664 = vst [vmem:[#allocation2 + $0x58] sm:$0xff] %v632_v11  }
  0x83   : > { %666 = vst [vmem:[#allocation2 + $0x60] sm:$0xff] %v634_v12  }
  0x84   : > { %668 = vst [vmem:[#allocation2 + $0x68] sm:$0xff] %v636_v13  }
  0x85   : > { %670 = vst [vmem:[#allocation2 + $0x70] sm:$0xff] %v638_v14  }
  0x86   : > { %672 = vst [vmem:[#allocation2 + $0x78] sm:$0xff] %v640_v15  }
  0x87   : > { %674 = vst [vmem:[#allocation3] sm:$0xff] %v2694_v16 }
  0x88 PF: > { %s3314_s18 = sld [smem:[#allocation26_spill]]  ;;  %v1798_v31 = vld [vmem:[%s2985_s15] sm:$0xf]  ;;  %v2082_v32 = vld [vmem:[%s2985_s15 + $0x4] sm:$0xf0]  ;;  %v2104_v63 = vld [vmem:[%s2992_s30 + $0x38] sm:$0xff] }
  0x89   : > { %v2081_v33 = vld [vmem:[%s2985_s15 + $0x4] sm:$0xf]  ;;  %v1800_v36 = vld [vmem:[%s2985_s15 + $0x8] sm:$0xf0]  ;;  %v1799_v37 = vor.u32 %v2082_v32, %v1798_v31  ;;  %v1806_v39 = vld [vmem:[%s2985_s15 + $0x10] sm:$0xf]  ;;  %1089 = vmatpush.bf16.msra.mxu2 %v2104_v63 }
  0x8a   : > { %v1803_v38 = vor.u32 %v2081_v33, %v1800_v36  ;;  %v2084_v40 = vld [vmem:[%s2985_s15 + $0x14] sm:$0xf0]  ;;  %v2083_v41 = vld [vmem:[%s2985_s15 + $0x14] sm:$0xf]  ;;  %v1808_v42 = vld [vmem:[%s2985_s15 + $0x18] sm:$0xf0] }
  0x8b   : > { %v1807_v43 = vor.u32 %v2084_v40, %v1806_v39  ;;  %v1811_v44 = vor.u32 %v2083_v41, %v1808_v42  ;;  %v1814_v45 = vld [vmem:[%s2985_s15 + $0x20] sm:$0xf]  ;;  %v2086_v46 = vld [vmem:[%s2985_s15 + $0x24] sm:$0xf0]  ;;  %v2085_v47 = vld [vmem:[%s2985_s15 + $0x24] sm:$0xf] }
  0x8c   : > { %v1816_v48 = vld [vmem:[%s2985_s15 + $0x28] sm:$0xf0]  ;;  %v1815_v49 = vor.u32 %v2086_v46, %v1814_v45  ;;  %v1822_v51 = vld [vmem:[%s2985_s15 + $0x30] sm:$0xf]  ;;  %v2088_v52 = vld [vmem:[%s2985_s15 + $0x34] sm:$0xf0] }
  0x8d   : > { %v1819_v50 = vor.u32 %v2085_v47, %v1816_v48  ;;  %v2087_v53 = vld [vmem:[%s2985_s15 + $0x34] sm:$0xf]  ;;  %v1824_v54 = vld [vmem:[%s2985_s15 + $0x38] sm:$0xf0]  ;;  %v1823_v55 = vor.u32 %v2088_v52, %v1822_v51  ;;  %v1830_v57 = vld [vmem:[%s2985_s15 + $0x40] sm:$0xf] }
  0x8e   : > { %p675_p1 = scmp.lt.s32.totalorder %s3314_s18, 0  ;;  %s676_s26 = ssub.s32 0, %s3314_s18  ;;  %v1827_v56 = vor.u32 %v2087_v53, %v1824_v54  ;;  %v2090_v58 = vld [vmem:[%s2985_s15 + $0x44] sm:$0xf0]  ;;  %v2089_v59 = vld [vmem:[%s2985_s15 + $0x44] sm:$0xf] }
  0x8f   : > { %s1791_s16 = smin.u32 %s3314_s18, %s676_s26  ;;  %v1832_v60 = vld [vmem:[%s2985_s15 + $0x48] sm:$0xf0]  ;;  %v1831_v61 = vor.u32 %v2090_v58, %v1830_v57  ;;  %v2103_v0 = vld [vmem:[%s2992_s30 + $0x30] sm:$0xff]  ;;  %v2092_v2 = vld [vmem:[%s2985_s15 + $0x54] sm:$0xf0]  ;;  %p1334_p0 = scmp.eq.s32.totalorder %s3314_s18, 1 }
  0x90   : > { %s678_s13 = sand.u32 1, %s1791_s16   ;;  %v1835_v62 = vor.u32 %v2089_v59, %v1832_v60  ;;  %1090 = vmatpush.bf16.msra.mxu2 %v2103_v0  ;;  %v1838_v1 = vld [vmem:[%s2985_s15 + $0x50] sm:$0xf]  ;;  %v2091_v3 = vld [vmem:[%s2985_s15 + $0x54] sm:$0xf]  ;;  %v2102_v7 = vld [vmem:[%s2992_s30 + $0x28] sm:$0xff] }
  0x91   : > { %s679_s11 = ssub.s32 0, %s678_s13  ;;  %v1840_v4 = vld [vmem:[%s2985_s15 + $0x58] sm:$0xf0]  ;;  %v1839_v5 = vor.u32 %v2092_v2, %v1838_v1  ;;  %v2101_v8 = vld [vmem:[%s2992_s30 + $0x20] sm:$0xff]  ;;  %v2094_v11 = vld [vmem:[%s2985_s15 + $0x64] sm:$0xf0] }
  0x92   : > { %s3345_s11 = smov (!%p675_p1, %s679_s11), %s678_s13  ;;  %v1843_v6 = vor.u32 %v2091_v3, %v1840_v4  ;;  %v2100_v9 = vld [vmem:[%s2992_s30 + $0x18] sm:$0xff]  ;;  %v1846_v10 = vld [vmem:[%s2985_s15 + $0x60] sm:$0xf]  ;;  %v2093_v12 = vld [vmem:[%s2985_s15 + $0x64] sm:$0xf]  ;;  %p1991_p2 = scmp.ne.s32.totalorder %s3314_s18, 1 }
  0x93   : > { %p1793_p13 = scmp.lt.s32.totalorder %s3345_s11, 0  ;;  %s685_s5 = sadd.s32 2, %s3345_s11  ;;  %v1848_v13 = vld [vmem:[%s2985_s15 + $0x68] sm:$0xf0]  ;;  %v1847_v14 = vor.u32 %v2094_v11, %v1846_v10  ;;  %v2099_v16 = vld [vmem:[%s2992_s30 + $0x10] sm:$0xff]  ;;  %v2112_v3 = vld [vmem:[%s2998_s10 + $0x38] sm:$0xff] }
  0x94   : > { %1091 = vmatpush.bf16.msra.mxu2 %v2102_v7  ;;  %v1851_v15 = vor.u32 %v2093_v12, %v1848_v13  ;;  %1230 = vmatpush.bf16.msra.mxu3 %v2112_v3  ;;  %v2111_v4 = vld [vmem:[%s2998_s10 + $0x30] sm:$0xff]  ;;  %v2110_v7 = vld [vmem:[%s2998_s10 + $0x28] sm:$0xff] }
  0x95   : > { %s3347_s5 = smov (!%p1793_p13, %s685_s5), %s3345_s11 }
  0x96   : > { %s2064_s20 = sshll.u32 %s3347_s5, 7  ;;  %s687_s14 = ssub.s32 1, %s3347_s5 }
  0x97   : > { %s3035_s7 = scalar_lea.vmem [#allocation2], %s2064_s20  ;;  %s1989_s26 = sshll.u32 %s687_s14, 5 }
  0x98   : > { %v2072_v17 = vld [vmem:[%s3035_s7 + $0x38] sm:$0xff]  ;;  %v2071_v19 = vld [vmem:[%s3035_s7 + $0x30] sm:$0xff]  ;;  %v2070_v21 = vld [vmem:[%s3035_s7 + $0x28] sm:$0xff]  ;;  %1092 = vmatpush.bf16.msra.mxu2 %v2101_v8  ;;  %1231 = vmatpush.bf16.msra.mxu3 %v2111_v4 }
  0x99   : > { %v2080_v18 = vld [vmem:[%s3035_s7 + $0x78] sm:$0xff]  ;;  %915 = vmatpush.bf16.msra.mxu0 %v2072_v17  ;;  %v2079_v20 = vld [vmem:[%s3035_s7 + $0x70] sm:$0xff]  ;;  %v2078_v22 = vld [vmem:[%s3035_s7 + $0x68] sm:$0xff] }
  0x9a   : > { %964 = vmatpush.bf16.msra.mxu1 %v2080_v18  ;;  %v2069_v23 = vld [vmem:[%s3035_s7 + $0x20] sm:$0xff]  ;;  %v2068_v25 = vld [vmem:[%s3035_s7 + $0x18] sm:$0xff]  ;;  %v2067_v27 = vld [vmem:[%s3035_s7 + $0x10] sm:$0xff] }
  0x9b   : > { %v2077_v24 = vld [vmem:[%s3035_s7 + $0x60] sm:$0xff]  ;;  %v2076_v26 = vld [vmem:[%s3035_s7 + $0x58] sm:$0xff]  ;;  %v2075_v28 = vld [vmem:[%s3035_s7 + $0x50] sm:$0xff] }
  0x9c   : > { %v2066_v29 = vld [vmem:[%s3035_s7 + $0x8] sm:$0xff]  ;;  %v2065_v34 = vld [vmem:[%s3035_s7] sm:$0xff]  ;;  %1093 = vmatpush.bf16.msra.mxu2 %v2100_v9  ;;  %v2098_v17 = vld [vmem:[%s2992_s30 + $0x8] sm:$0xff]  ;;  %1232 = vmatpush.bf16.msra.mxu3 %v2110_v7 }
  0x9d   : > { %916 = vmatpush.bf16.msra.mxu0 %v2071_v19  ;;  %v2074_v30 = vld [vmem:[%s3035_s7 + $0x48] sm:$0xff]  ;;  %v2073_v35 = vld [vmem:[%s3035_s7 + $0x40] sm:$0xff]  ;;  %v1854_v19 = vld [vmem:[%s2985_s15 + $0x70] sm:$0xf] }
  0x9e   : > { %965 = vmatpush.bf16.msra.mxu1 %v2079_v20  ;;  %v2097_v18 = vld [vmem:[%s2992_s30] sm:$0xff]  ;;  %v2096_v20 = vld [vmem:[%s2985_s15 + $0x74] sm:$0xf0] }
  0x9f   : > { %v2109_v8 = vld [vmem:[%s2998_s10 + $0x20] sm:$0xff] }
  0xa0   : > { %1094 = vmatpush.bf16.msra.mxu2 %v2099_v16  ;;  %1233 = vmatpush.bf16.msra.mxu3 %v2109_v8 }
  0xa1   : > { %917 = vmatpush.bf16.msra.mxu0 %v2070_v21  ;;  %v2095_v21 = vld [vmem:[%s2985_s15 + $0x74] sm:$0xf] }
  0xa2   : > { %966 = vmatpush.bf16.msra.mxu1 %v2078_v22  ;;  %v1856_v22 = vld [vmem:[%s2985_s15 + $0x78] sm:$0xf0] }
  0xa4   : > { %1095 = vmatpush.bf16.msra.mxu2 %v2098_v17  ;;  %v2107_v17 = vld [vmem:[%s2998_s10 + $0x10] sm:$0xff] }
  0xa5   : > { %918 = vmatpush.bf16.msra.mxu0 %v2069_v23  ;;  %v1855_v23 = vor.u32 %v2096_v20, %v1854_v19 }
  0xa6   : > { %967 = vmatpush.bf16.msra.mxu1 %v2077_v24  ;;  %v1859_v24 = vor.u32 %v2095_v21, %v1856_v22 }
  0xa8   : > { %1096 = vmatpush.bf16.msra.mxu2 %v2097_v18  ;;  %v2106_v18 = vld [vmem:[%s2998_s10 + $0x8] sm:$0xff] }
  0xa9   : > { %919 = vmatpush.bf16.msra.mxu0 %v2068_v25 }
  0xaa   : > { %968 = vmatpush.bf16.msra.mxu1 %v2076_v26 }
  0xad   : > { %920 = vmatpush.bf16.msra.mxu0 %v2067_v27 }
  0xae   : > { %969 = vmatpush.bf16.msra.mxu1 %v2075_v28 }
  0xb1   : > { %921 = vmatpush.bf16.msra.mxu0 %v2066_v29 }
  0xb2   : > { %970 = vmatpush.bf16.msra.mxu1 %v2074_v30 }
  0xb5   : > { %922 = vmatpush.bf16.msra.mxu0 %v2065_v34 }
  0xb6   : > { %971 = vmatpush.bf16.msra.mxu1 %v2073_v35 }
  0xb8   : > { %923 = vmatmul.bf16.vlgmr.msra.gmra.mxu0 %v1799_v37 }
  0xb9   : > { %972 = vmatmul.bf16.vlgmr.msra.gmra.mxu1 %v1803_v38 }
  0xc8   : > { %928 = vmatmul.bf16.gmra.mxu0 %v1807_v43 }
  0xc9   : > { %977 = vmatmul.bf16.gmra.mxu1 %v1811_v44 }
  0xd8   : > { %933 = vmatmul.bf16.gmra.mxu0 %v1815_v49 }
  0xd9   : > { %982 = vmatmul.bf16.gmra.mxu1 %v1819_v50 }
  0xe8   : > { %938 = vmatmul.bf16.gmra.mxu0 %v1823_v55 }
  0xe9   : > { %987 = vmatmul.bf16.gmra.mxu1 %v1827_v56 }
  0xf8   : > { %943 = vmatmul.bf16.gmra.mxu0 %v1831_v61 }
  0xf9   : > { %992 = vmatmul.bf16.gmra.mxu1 %v1835_v62 }
 0x108   : > { %948 = vmatmul.bf16.gmra.mxu0 %v1839_v5 }
 0x109   : > { %997 = vmatmul.bf16.gmra.mxu1 %v1843_v6 }
 0x118   : > { %953 = vmatmul.bf16.gmra.mxu0 %v1847_v14  ;;  %v2108_v14 = vld [vmem:[%s2998_s10 + $0x18] sm:$0xff] }
 0x119   : > { %1002 = vmatmul.bf16.gmra.mxu1 %v1851_v15  ;;  %1234 = vmatpush.bf16.msra.mxu3 %v2108_v14 }
 0x11d   : > { %1235 = vmatpush.bf16.msra.mxu3 %v2107_v17 }
 0x121   : > { %1236 = vmatpush.bf16.msra.mxu3 %v2106_v18  ;;  %v3111_v18 = vld [vmem:[%s603_s8] ss:$0 sm:$0xff] }
 0x128   : > { %958 = vmatmul.bf16.gmra.mxu0 %v1855_v23  ;;  %v2105_v23 = vld [vmem:[%s2998_s10] sm:$0xff]  ;;  %s3316_s10 = sld [smem:[#allocation25_spill]] }
 0x129   : > { %1007 = vmatmul.bf16.gmra.mxu1 %v1859_v24  ;;  %1237 = vmatpush.bf16.msra.mxu3 %v2105_v23 }
 0x12e   : > { %s1988_s1 = sshll.u32 %s3316_s10, 7 }
 0x12f   : > { %s1312_s2 = sshra.s32 %s1988_s1, 3 }
 0x130   : > { %s1315_s16 = sadd.s32 %s1989_s26, %s1312_s2 }
 0x131   : > { %s1990_s13 = sshll.u32 %s1315_s16, 2 }
 0x132   : > { %s3128_s4 = scalar_lea.vmem [#allocation2], %s1990_s13 }
 0x135   : > { %v924_v25 = vpop.f32.mrf.mxu0 }
 0x136   : > { %v973_v26 = vpop.f32.mrf.mxu1 }
 0x137   : > { %v974_v29 = vadd.f32 %v973_v26, %v924_v25  ;;  %v2329_v26 = vld [vmem:[%s600_s12] ss:$0 sm:$0xff] }
 0x13d   : > { %v926_v27 = vpop.f32.mrf.mxu0 }
 0x13e   : > { %v975_v28 = vpop.f32.mrf.mxu1 }
 0x13f   : > { %v976_v30 = vadd.f32 %v975_v28, %v926_v27 }
 0x141   : > { %v1013_v31 = vpack.c.bf16 %v976_v30, %v974_v29 }
 0x143   : > { %1097 = vmatmul.bf16.vlgmr.msra.gmra.mxu2 %v1013_v31 }
 0x145   : > { %v929_v32 = vpop.f32.mrf.mxu0 }
 0x146   : > { %v978_v33 = vpop.f32.mrf.mxu1 }
 0x147   : > { %v979_v36 = vadd.f32 %v978_v33, %v929_v32 }
 0x14d   : > { %v931_v34 = vpop.f32.mrf.mxu0 }
 0x14e   : > { %v980_v35 = vpop.f32.mrf.mxu1 }
 0x14f   : > { %v981_v37 = vadd.f32 %v980_v35, %v931_v34 }
 0x151   : > { %v1014_v38 = vpack.c.bf16 %v981_v37, %v979_v36 }
 0x153   : > { %1102 = vmatmul.bf16.gmra.mxu2 %v1014_v38 }
 0x155   : > { %v934_v39 = vpop.f32.mrf.mxu0 }
 0x156   : > { %v983_v40 = vpop.f32.mrf.mxu1 }
 0x157   : > { %v984_v43 = vadd.f32 %v983_v40, %v934_v39 }
 0x15d   : > { %v936_v41 = vpop.f32.mrf.mxu0 }
 0x15e   : > { %v985_v42 = vpop.f32.mrf.mxu1 }
 0x15f   : > { %v986_v44 = vadd.f32 %v985_v42, %v936_v41 }
 0x161   : > { %v1015_v45 = vpack.c.bf16 %v986_v44, %v984_v43 }
 0x163   : > { %1107 = vmatmul.bf16.gmra.mxu2 %v1015_v45 }
 0x165   : > { %v939_v46 = vpop.f32.mrf.mxu0 }
 0x166   : > { %v988_v47 = vpop.f32.mrf.mxu1 }
 0x167   : > { %v989_v50 = vadd.f32 %v988_v47, %v939_v46 }
 0x16d   : > { %v941_v48 = vpop.f32.mrf.mxu0 }
 0x16e   : > { %v990_v49 = vpop.f32.mrf.mxu1 }
 0x16f   : > { %v991_v51 = vadd.f32 %v990_v49, %v941_v48 }
 0x171   : > { %v1016_v52 = vpack.c.bf16 %v991_v51, %v989_v50 }
 0x173   : > { %1112 = vmatmul.bf16.gmra.mxu2 %v1016_v52 }
 0x175   : > { %v944_v53 = vpop.f32.mrf.mxu0 }
 0x176   : > { %v993_v54 = vpop.f32.mrf.mxu1 }
 0x177   : > { %v994_v57 = vadd.f32 %v993_v54, %v944_v53 }
 0x17d   : > { %v946_v55 = vpop.f32.mrf.mxu0 }
 0x17e   : > { %v995_v56 = vpop.f32.mrf.mxu1 }
 0x17f   : > { %v996_v58 = vadd.f32 %v995_v56, %v946_v55 }
 0x181   : > { %v1017_v59 = vpack.c.bf16 %v996_v58, %v994_v57 }
 0x183   : > { %1117 = vmatmul.bf16.gmra.mxu2 %v1017_v59 }
 0x185   : > { %v949_v60 = vpop.f32.mrf.mxu0 }
 0x186   : > { %v998_v61 = vpop.f32.mrf.mxu1 }
 0x187   : > { %v999_v0 = vadd.f32 %v998_v61, %v949_v60 }
 0x18d   : > { %v951_v62 = vpop.f32.mrf.mxu0 }
 0x18e   : > { %v1000_v63 = vpop.f32.mrf.mxu1 }
 0x18f   : > { %v1001_v1 = vadd.f32 %v1000_v63, %v951_v62 }
 0x191   : > { %v1018_v2 = vpack.c.bf16 %v1001_v1, %v999_v0 }
 0x193   : > { %1122 = vmatmul.bf16.gmra.mxu2 %v1018_v2 }
 0x195   : > { %v954_v5 = vpop.f32.mrf.mxu0 }
 0x196   : > { %v1003_v6 = vpop.f32.mrf.mxu1 }
 0x197   : > { %v1004_v11 = vadd.f32 %v1003_v6, %v954_v5 }
 0x19d   : > { %v956_v9 = vpop.f32.mrf.mxu0 }
 0x19e   : > { %v1005_v10 = vpop.f32.mrf.mxu1 }
 0x19f   : > { %v1006_v12 = vadd.f32 %v1005_v10, %v956_v9 }
 0x1a1   : > { %v1019_v13 = vpack.c.bf16 %v1006_v12, %v1004_v11 }
 0x1a3   : > { %1127 = vmatmul.bf16.gmra.mxu2 %v1019_v13 }
 0x1a5   : > { %v959_v15 = vpop.f32.mrf.mxu0 }
 0x1a6   : > { %v1008_v16 = vpop.f32.mrf.mxu1 }
 0x1a7   : > { %v1009_v21 = vadd.f32 %v1008_v16, %v959_v15 }
 0x1ad   : > { %v961_v19 = vpop.f32.mrf.mxu0 }
 0x1ae   : > { %v1010_v20 = vpop.f32.mrf.mxu1 }
 0x1af   : > { %v1011_v22 = vadd.f32 %v1010_v20, %v961_v19 }
 0x1b1   : > { %v1020_v24 = vpack.c.bf16 %v1011_v22, %v1009_v21 }
 0x1b3   : > { %1132 = vmatmul.bf16.gmra.mxu2 %v1020_v24 }
 0x1c6   : > { %v1098_v25 = vpop.f32.mrf.mxu2 }
 0x1c7   : > { %v1099_v27 = vadd.f32 %v2329_v26, %v1098_v25 }
 0x1c9   : > { %v1138_v30 = vmax.f32 %v1099_v27, 0.0 }
 0x1ce   : > { %v1100_v28 = vpop.f32.mrf.mxu2 }
 0x1cf   : > { %v1101_v29 = vadd.f32 %v2329_v26, %v1100_v28 }
 0x1d1   : > { %v1139_v31 = vmax.f32 %v1101_v29, 0.0 }
 0x1d3   : > { %v1154_v32 = vpack.c.bf16 %v1139_v31, %v1138_v30 }
 0x1d5   : > { %1238 = vmatmul.bf16.vlgmr.msra.gmra.mxu3 %v1154_v32 }
 0x1d6   : > { %v1103_v33 = vpop.f32.mrf.mxu2 }
 0x1d7   : > { %v1104_v34 = vadd.f32 %v2329_v26, %v1103_v33 }
 0x1d9   : > { %v1140_v37 = vmax.f32 %v1104_v34, 0.0 }
 0x1de   : > { %v1105_v35 = vpop.f32.mrf.mxu2 }
 0x1df   : > { %v1106_v36 = vadd.f32 %v2329_v26, %v1105_v35 }
 0x1e1   : > { %v1141_v38 = vmax.f32 %v1106_v36, 0.0 }
 0x1e3   : > { %v1155_v39 = vpack.c.bf16 %v1141_v38, %v1140_v37 }
 0x1e5   : > { %1243 = vmatmul.bf16.gmra.mxu3 %v1155_v39 }
 0x1e6   : > { %v1108_v40 = vpop.f32.mrf.mxu2 }
 0x1e7   : > { %v1109_v41 = vadd.f32 %v2329_v26, %v1108_v40 }
 0x1e9   : > { %v1142_v44 = vmax.f32 %v1109_v41, 0.0 }
 0x1ee   : > { %v1110_v42 = vpop.f32.mrf.mxu2 }
 0x1ef   : > { %v1111_v43 = vadd.f32 %v2329_v26, %v1110_v42 }
 0x1f1   : > { %v1143_v45 = vmax.f32 %v1111_v43, 0.0 }
 0x1f3   : > { %v1156_v46 = vpack.c.bf16 %v1143_v45, %v1142_v44 }
 0x1f5   : > { %1248 = vmatmul.bf16.gmra.mxu3 %v1156_v46 }
 0x1f6   : > { %v1113_v47 = vpop.f32.mrf.mxu2 }
 0x1f7   : > { %v1114_v48 = vadd.f32 %v2329_v26, %v1113_v47 }
 0x1f9   : > { %v1144_v51 = vmax.f32 %v1114_v48, 0.0 }
 0x1fe   : > { %v1115_v49 = vpop.f32.mrf.mxu2 }
 0x1ff   : > { %v1116_v50 = vadd.f32 %v2329_v26, %v1115_v49 }
 0x201   : > { %v1145_v52 = vmax.f32 %v1116_v50, 0.0 }
 0x203   : > { %v1157_v53 = vpack.c.bf16 %v1145_v52, %v1144_v51 }
 0x205   : > { %1253 = vmatmul.bf16.gmra.mxu3 %v1157_v53 }
 0x206   : > { %v1118_v54 = vpop.f32.mrf.mxu2 }
 0x207   : > { %v1119_v55 = vadd.f32 %v2329_v26, %v1118_v54 }
 0x209   : > { %v1146_v58 = vmax.f32 %v1119_v55, 0.0 }
 0x20e   : > { %v1120_v56 = vpop.f32.mrf.mxu2 }
 0x20f   : > { %v1121_v57 = vadd.f32 %v2329_v26, %v1120_v56 }
 0x211   : > { %v1147_v59 = vmax.f32 %v1121_v57, 0.0 }
 0x213   : > { %v1158_v60 = vpack.c.bf16 %v1147_v59, %v1146_v58 }
 0x215   : > { %1258 = vmatmul.bf16.gmra.mxu3 %v1158_v60 }
 0x216   : > { %v1123_v61 = vpop.f32.mrf.mxu2 }
 0x217   : > { %v1124_v62 = vadd.f32 %v2329_v26, %v1123_v61 }
 0x219   : > { %v1148_v1 = vmax.f32 %v1124_v62, 0.0 }
 0x21e   : > { %v1125_v63 = vpop.f32.mrf.mxu2 }
 0x21f   : > { %v1126_v0 = vadd.f32 %v2329_v26, %v1125_v63 }
 0x221   : > { %v1149_v2 = vmax.f32 %v1126_v0, 0.0 }
 0x223   : > { %v1159_v3 = vpack.c.bf16 %v1149_v2, %v1148_v1 }
 0x225   : > { %1263 = vmatmul.bf16.gmra.mxu3 %v1159_v3 }
 0x226   : > { %v1128_v4 = vpop.f32.mrf.mxu2 }
 0x227   : > { %v1129_v5 = vadd.f32 %v2329_v26, %v1128_v4 }
 0x229   : > { %v1150_v8 = vmax.f32 %v1129_v5, 0.0 }
 0x22e   : > { %v1130_v6 = vpop.f32.mrf.mxu2 }
 0x22f   : > { %v1131_v7 = vadd.f32 %v2329_v26, %v1130_v6 }
 0x231   : > { %v1151_v9 = vmax.f32 %v1131_v7, 0.0 }
 0x233   : > { %v1160_v10 = vpack.c.bf16 %v1151_v9, %v1150_v8 }
 0x235   : > { %1268 = vmatmul.bf16.gmra.mxu3 %v1160_v10 }
 0x236   : > { %v1133_v11 = vpop.f32.mrf.mxu2 }
 0x237   : > { %v1134_v12 = vadd.f32 %v2329_v26, %v1133_v11 }
 0x239   : > { %v1152_v15 = vmax.f32 %v1134_v12, 0.0 }
 0x23e   : > { %v1135_v13 = vpop.f32.mrf.mxu2 }
 0x23f   : > { %v1136_v14 = vadd.f32 %v2329_v26, %v1135_v13 }
 0x241   : > { %v1153_v16 = vmax.f32 %v1136_v14, 0.0 }
 0x243   : > { %v1161_v17 = vpack.c.bf16 %v1153_v16, %v1152_v15 }
 0x245   : > { %1273 = vmatmul.bf16.gmra.mxu3 %v1161_v17 }
 0x258   : > { %v1239_v19 = vpop.f32.mrf.mxu3 }
 0x259   : > { %v1240_v20 = vadd.f32 %v3111_v18, %v1239_v19 }
 0x25b   : > { %v3117_v21 = vmax.f32 %v1240_v20, 0.0 }
 0x25d   : > { %v1295_v22 = vpack.c.bf16 %v3117_v21, %v3117_v21 }
 0x260   : > { %v1241_v23 = vpop.f32.mrf.mxu3 }
 0x261   : > { %v1242_v24 = vadd.f32 %v3111_v18, %v1241_v23 }
 0x263   : > { %v3122_v25 = vmax.f32 %v1242_v24, 0.0 }
 0x265   : > { %v1296_v26 = vpack.c.bf16 %v3122_v25, %v3122_v25  ;;  %v2132_v27 = vpack.c.bf16 %v3122_v25, %v3117_v21 }
 0x267   : > { %2133 = vst [vmem:[%s3128_s4] sm:$0xff] %v2132_v27  }
 0x268   : > { %v1244_v28 = vpop.f32.mrf.mxu3 }
 0x269   : > { %v1245_v29 = vadd.f32 %v3111_v18, %v1244_v28 }
 0x26b   : > { %v3132_v30 = vmax.f32 %v1245_v29, 0.0 }
 0x26d   : > { %v1297_v31 = vpack.c.bf16 %v3132_v30, %v3132_v30 }
 0x270   : > { %v1246_v32 = vpop.f32.mrf.mxu3 }
 0x271   : > { %v1247_v33 = vadd.f32 %v3111_v18, %v1246_v32 }
 0x273   : > { %v3137_v34 = vmax.f32 %v1247_v33, 0.0 }
 0x275   : > { %v1298_v35 = vpack.c.bf16 %v3137_v34, %v3137_v34  ;;  %v2137_v36 = vpack.c.bf16 %v3137_v34, %v3132_v30 }
 0x277   : > { %2169 = vst [vmem:[%s3128_s4 + $0x8] sm:$0xff] %v2137_v36  }
 0x278   : > { %v1249_v37 = vpop.f32.mrf.mxu3 }
 0x279   : > { %v1250_v38 = vadd.f32 %v3111_v18, %v1249_v37 }
 0x27b   : > { %v3145_v39 = vmax.f32 %v1250_v38, 0.0 }
 0x27d   : > { %v1299_v40 = vpack.c.bf16 %v3145_v39, %v3145_v39 }
 0x280   : > { %v1251_v41 = vpop.f32.mrf.mxu3 }
 0x281   : > { %v1252_v42 = vadd.f32 %v3111_v18, %v1251_v41 }
 0x283   : > { %v3150_v43 = vmax.f32 %v1252_v42, 0.0 }
 0x285   : > { %v1300_v44 = vpack.c.bf16 %v3150_v43, %v3150_v43  ;;  %v2142_v45 = vpack.c.bf16 %v3150_v43, %v3145_v39 }
 0x287   : > { %2170 = vst [vmem:[%s3128_s4 + $0x10] sm:$0xff] %v2142_v45  }
 0x288   : > { %v1254_v46 = vpop.f32.mrf.mxu3 }
 0x289   : > { %v1255_v47 = vadd.f32 %v3111_v18, %v1254_v46 }
 0x28b   : > { %v3158_v48 = vmax.f32 %v1255_v47, 0.0 }
 0x28d   : > { %v1301_v49 = vpack.c.bf16 %v3158_v48, %v3158_v48 }
 0x290   : > { %v1256_v50 = vpop.f32.mrf.mxu3 }
 0x291   : > { %v1257_v51 = vadd.f32 %v3111_v18, %v1256_v50 }
 0x293   : > { %v1286_v52 = vmax.f32 %v1257_v51, 0.0 }
 0x295   : > { %v1302_v53 = vpack.c.bf16 %v1286_v52, %v1286_v52  ;;  %v2147_v54 = vpack.c.bf16 %v1286_v52, %v3158_v48 }
 0x297   : > { %2171 = vst [vmem:[%s3128_s4 + $0x18] sm:$0xff] %v2147_v54  }
 0x298   : > { %v1259_v55 = vpop.f32.mrf.mxu3 }
 0x299   : > { %v1260_v56 = vadd.f32 %v3111_v18, %v1259_v55 }
 0x29b   : > { %v1287_v57 = vmax.f32 %v1260_v56, 0.0 }
 0x29d   : > { %v1303_v58 = vpack.c.bf16 %v1287_v57, %v1287_v57 }
 0x2a0   : > { %v1261_v59 = vpop.f32.mrf.mxu3 }
 0x2a1   : > { %v1262_v60 = vadd.f32 %v3111_v18, %v1261_v59 }
 0x2a3   : > { %v1288_v61 = vmax.f32 %v1262_v60, 0.0 }
 0x2a5   : > { %v1304_v62 = vpack.c.bf16 %v1288_v61, %v1288_v61  ;;  %v2152_v63 = vpack.c.bf16 %v1288_v61, %v1287_v57 }
 0x2a7   : > { %2172 = vst [vmem:[%s3128_s4 + $0x20] sm:$0xff] %v2152_v63  }
 0x2a8   : > { %v1264_v0 = vpop.f32.mrf.mxu3 }
 0x2a9   : > { %v1265_v1 = vadd.f32 %v3111_v18, %v1264_v0 }
 0x2ab   : > { %v1289_v2 = vmax.f32 %v1265_v1, 0.0 }
 0x2ad   : > { %v1305_v3 = vpack.c.bf16 %v1289_v2, %v1289_v2 }
 0x2b0   : > { %v1266_v4 = vpop.f32.mrf.mxu3 }
 0x2b1   : > { %v1267_v5 = vadd.f32 %v3111_v18, %v1266_v4 }
 0x2b3   : > { %v1290_v6 = vmax.f32 %v1267_v5, 0.0 }
 0x2b5   : > { %v1306_v7 = vpack.c.bf16 %v1290_v6, %v1290_v6  ;;  %v2157_v8 = vpack.c.bf16 %v1290_v6, %v1289_v2 }
 0x2b7   : > { %2173 = vst [vmem:[%s3128_s4 + $0x28] sm:$0xff] %v2157_v8  }
 0x2b8   : > { %v1269_v9 = vpop.f32.mrf.mxu3 }
 0x2b9   : > { %v1270_v10 = vadd.f32 %v3111_v18, %v1269_v9 }
 0x2bb   : > { %v1291_v11 = vmax.f32 %v1270_v10, 0.0 }
 0x2bd   : > { %v1307_v12 = vpack.c.bf16 %v1291_v11, %v1291_v11 }
 0x2c0   : > { %v1271_v13 = vpop.f32.mrf.mxu3 }
 0x2c1   : > { %v1272_v14 = vadd.f32 %v3111_v18, %v1271_v13 }
 0x2c3   : > { %v1292_v15 = vmax.f32 %v1272_v14, 0.0 }
 0x2c5   : > { %v1308_v16 = vpack.c.bf16 %v1292_v15, %v1292_v15  ;;  %v2162_v17 = vpack.c.bf16 %v1292_v15, %v1291_v11 }
 0x2c7   : > { %2174 = vst [vmem:[%s3128_s4 + $0x30] sm:$0xff] %v2162_v17  }
 0x2c8   : > { %v1274_v19 = vpop.f32.mrf.mxu3 }
 0x2c9   : > { %v1275_v20 = vadd.f32 %v3111_v18, %v1274_v19 }
 0x2cb   : > { %v1293_v23 = vmax.f32 %v1275_v20, 0.0 }
 0x2cd   : > { %v1309_v24 = vpack.c.bf16 %v1293_v23, %v1293_v23 }
 0x2d0   : > { %v1276_v27 = vpop.f32.mrf.mxu3 }
 0x2d1   : > { %v1277_v28 = vadd.f32 %v3111_v18, %v1276_v27 }
 0x2d3   : > { %v1294_v29 = vmax.f32 %v1277_v28, 0.0  ;;  %1337 = sbr.rel (%p1991_p2) target bundleno = 897 (0x381), region = 100 }
 0x2d5   : > { %v1310_v32 = vpack.c.bf16 %v1294_v29, %v1294_v29  ;;  %v2167_v33 = vpack.c.bf16 %v1294_v29, %v1293_v23 }
 0x2d7   : > { %2175 = vst [vmem:[%s3128_s4 + $0x38] sm:$0xff] %v2167_v33  }
 0x2d8   : > { %v1371_v36 = vunpack.c.l.b16 %v1309_v24  ;;  %v1372_v37 = vunpack.c.l.b16 %v1310_v32  ;;  %v1369_v38 = vunpack.c.l.b16 %v1307_v12  ;;  %v1370_v41 = vunpack.c.l.b16 %v1308_v16 }
 0x2d9   : > { %v1367_v46 = vunpack.c.l.b16 %v1305_v3  ;;  %v1368_v47 = vunpack.c.l.b16 %v1306_v7  ;;  %v1365_v51 = vunpack.c.l.b16 %v1303_v58  ;;  %v1366_v18 = vunpack.c.l.b16 %v1304_v62 }
 0x2da   : > { %v1380_v42 = vpack.c.b16 %v1372_v37, %v1371_v36  ;;  %v1379_v45 = vpack.c.b16 %v1370_v41, %v1369_v38  ;;  %v1363_v54 = vunpack.c.l.b16 %v1301_v49  ;;  %v1364_v55 = vunpack.c.l.b16 %v1302_v53 }
 0x2db   : > { %v1378_v50 = vpack.c.b16 %v1368_v47, %v1367_v46  ;;  %v1377_v52 = vpack.c.b16 %v1366_v18, %v1365_v51  ;;  %v1361_v57 = vunpack.c.l.b16 %v1299_v40  ;;  %v1362_v59 = vunpack.c.l.b16 %v1300_v44  ;;  %v1339_v44 = vld [vmem:[%s531_s3] sm:$0xff] }
 0x2dc   : > { %1389 = vmatpush.bf16.msra.mxu0 %v1380_v42  ;;  %v1376_v56 = vpack.c.b16 %v1364_v55, %v1363_v54  ;;  %v1359_v60 = vunpack.c.l.b16 %v1297_v31  ;;  %v1360_v48 = vunpack.c.l.b16 %v1298_v35  ;;  %v1357_v39 = vunpack.c.l.b16 %v1295_v22  ;;  %v1338_v31 = vld [vmem:[#allocation3] sm:$0xff] }
 0x2dd   : > { %v1375_v58 = vpack.c.b16 %v1362_v59, %v1361_v57  ;;  %v1358_v40 = vunpack.c.l.b16 %v1296_v26  ;;  %v1340_v30 = vpack.c.bf16 %v1339_v44, %v1339_v44 }
 0x2de   : > { %v1374_v49 = vpack.c.b16 %v1360_v48, %v1359_v60 }
 0x2df   : > { %v1373_v43 = vpack.c.b16 %v1358_v40, %v1357_v39 }
 0x2e0   : > { %1390 = vmatpush.bf16.msra.mxu0 %v1379_v45 }
 0x2e4   : > { %1391 = vmatpush.bf16.msra.mxu0 %v1378_v50 }
 0x2e8   : > { %1392 = vmatpush.bf16.msra.mxu0 %v1377_v52 }
 0x2ec   : > { %1393 = vmatpush.bf16.msra.mxu0 %v1376_v56 }
 0x2f0   : > { %1394 = vmatpush.bf16.msra.mxu0 %v1375_v58 }
 0x2f4   : > { %1395 = vmatpush.bf16.msra.mxu0 %v1374_v49 }
 0x2f8   : > { %1396 = vmatpush.bf16.msra.mxu0 %v1373_v43 }
 0x2fb   : > { %1397 = vmatmul.bf16.vlgmr.msra.gmra.mxu0 %v1340_v30 }
 0x378   : > { %v1398_v34 = vpop.f32.mrf.mxu0 }
 0x379   : > { %v1402_v35 = vadd.f32 %v1398_v34, %v1338_v31 }
 0x37b   : > { %1403 = vst [vmem:[#allocation3] sm:$0xff] %v1402_v35 }
 0x380   : > { %v1400_v53 = vpop.f32.mrf.mxu0 }
 0x381 PF: > { %s3318_s8 = sld [smem:[#allocation25_spill]] }
 0x387   : > { %p1404_p4 = scmp.eq.s32.totalorder %s3318_s8, 1 }
 0x389   : > { %p1405_p7 = pnand %p1404_p4, %p1334_p0 }
 0x38a   : > { %s3320_s11 = sld [smem:[#allocation39_spill]] (!%p1405_p7) }
 0x38b   : > { %1408 = sbr.rel (%p1405_p7) target bundleno = 1210 (0x4ba), region = 104  ;;  %s3321_s7 = sld [smem:[#allocation40_spill]] (!%p1405_p7) }
 0x390   : > { %v2120_v21 = vld [vmem:[#allocation13 + $0x38] sm:$0xff]  ;;  %v2119_v22 = vld [vmem:[#allocation13 + $0x30] sm:$0xff]  ;;  %v2118_v61 = vld [vmem:[#allocation13 + $0x28] sm:$0xff] }
 0x391   : > { %1479 = vmatpush.bf16.msra.mxu0 %v2120_v21  ;;  %v2128_v25 = vld [vmem:[#allocation15 + $0x38] sm:$0xff]  ;;  %v2127_v26 = vld [vmem:[#allocation15 + $0x30] sm:$0xff]  ;;  %v2126_v62 = vld [vmem:[#allocation15 + $0x28] sm:$0xff] }
 0x392   : > { %1562 = vmatpush.bf16.msra.mxu1 %v2128_v25  ;;  %v2117_v63 = vld [vmem:[#allocation13 + $0x20] sm:$0xff]  ;;  %v2116_v1 = vld [vmem:[#allocation13 + $0x18] sm:$0xff]  ;;  %v2115_v3 = vld [vmem:[#allocation13 + $0x10] sm:$0xff] }
 0x393   : > { %v2125_v0 = vld [vmem:[#allocation15 + $0x20] sm:$0xff]  ;;  %v2124_v2 = vld [vmem:[#allocation15 + $0x18] sm:$0xff]  ;;  %v2123_v4 = vld [vmem:[#allocation15 + $0x10] sm:$0xff] }
 0x394   : > { %v2114_v5 = vld [vmem:[#allocation13 + $0x8] sm:$0xff]  ;;  %v2113_v6 = vld [vmem:[#allocation13] sm:$0xff] }
 0x395   : > { %1480 = vmatpush.bf16.msra.mxu0 %v2119_v22  ;;  %v1409_v7 = vld [vmem:[#allocation3] sm:$0xff]  ;;  %v2121_v10 = vld [vmem:[#allocation15] sm:$0xff] }
 0x396   : > { %1563 = vmatpush.bf16.msra.mxu1 %v2127_v26  ;;  %v1410_v8 = vpack.c.bf16 %v1409_v7, %v1409_v7  ;;  %v2122_v9 = vld [vmem:[#allocation15 + $0x8] sm:$0xff] }
 0x397   : > { %v2331_v11 = vld [vmem:[%s3320_s11] ss:$0 sm:$0xff] }
 0x398   : > { %v2332_v17 = vld [vmem:[%s3321_s7] ss:$0 sm:$0xff] }
 0x399   : > { %1481 = vmatpush.bf16.msra.mxu0 %v2118_v61 }
 0x39a   : > { %1564 = vmatpush.bf16.msra.mxu1 %v2126_v62 }
 0x39d   : > { %1482 = vmatpush.bf16.msra.mxu0 %v2117_v63 }
 0x39e   : > { %1565 = vmatpush.bf16.msra.mxu1 %v2125_v0 }
 0x3a1   : > { %1483 = vmatpush.bf16.msra.mxu0 %v2116_v1 }
 0x3a2   : > { %1566 = vmatpush.bf16.msra.mxu1 %v2124_v2 }
 0x3a5   : > { %1484 = vmatpush.bf16.msra.mxu0 %v2115_v3 }
 0x3a6   : > { %1567 = vmatpush.bf16.msra.mxu1 %v2123_v4 }
 0x3a9   : > { %1485 = vmatpush.bf16.msra.mxu0 %v2114_v5 }
 0x3aa   : > { %1568 = vmatpush.bf16.msra.mxu1 %v2122_v9 }
 0x3ad   : > { %1486 = vmatpush.bf16.msra.mxu0 %v2113_v6 }
 0x3ae   : > { %1569 = vmatpush.bf16.msra.mxu1 %v2121_v10 }
 0x3b0   : > { %1487 = vmatmul.bf16.vlgmr.msra.gmra.mxu0 %v1410_v8 }
 0x42d   : > { %v1488_v12 = vpop.f32.mrf.mxu0 }
 0x42e   : > { %v1489_v13 = vadd.f32 %v2331_v11, %v1488_v12 }
 0x430   : > { %v1492_v14 = vmax.f32 %v1489_v13, 0.0 }
 0x432   : > { %v1493_v15 = vpack.c.bf16 %v1492_v14, %v1492_v14 }
 0x434   : > { %1570 = vmatmul.bf16.vlgmr.msra.gmra.mxu1 %v1493_v15 }
 0x435   : > { %v1490_v16 = vpop.f32.mrf.mxu0 }
 0x4b1   : > { %v1571_v19 = vpop.f32.mrf.mxu1 }
 0x4b2   : > { %v1572_v20 = vadd.f32 %v2332_v17, %v1571_v19 }
 0x4b4   : > { %1575 = vst [vmem:[#allocation16] sm:$0xff] %v1572_v20 }
 0x4b9   : > { %v1573_v23 = vpop.f32.mrf.mxu1 }
 0x4ba PF: > { %p2230_p9 = scmp.eq.s32.totalorder %s2812_s28, 3  ;;  %s3322_s29 = sld [smem:[#allocation41_spill]] }
 0x4bb   : > { %s2695_s24 = smov [#allocation16]  }
 0x4bc   : > { %s1582_s17 = sshll.u32 %s2695_s24, 4  ;;  %s1583_s17 = int_to_ptr.vmem [resolvable:$true] %s1582_s17 }
 0x4c0   : > { %s1584_s10 = sshll.u32 %s3322_s29, 4  ;;  %s1585_s10 = int_to_ptr.hbm [resolvable:$true] %s1584_s10 }
 0x4c1   : > { %2197 = dma.vmem_to_hbm [thread:$0]  (%p2230_p9), %s1583_s17, 128, %s1585_s10, [#allocation6]  }
 0x4c2   : > { %2640 = dma.done.wait (%p2230_p9), [#allocation6], 128  }
 0x4c3   : > { %2642 = vsyncadd (%p2230_p9), [#allocation6], 4294967168 }
 0x4c4 PF: > { %s30_s27 = sadd.s32 1, %s2685_s27   ;;  %s3323_s17 = sld [smem:[#allocation24_spill]] }
 0x4c5   : > { %p27_p10 = scmp.ge.s32.totalorder %s30_s27, 6   ;;  %s3324_s12 = sld [smem:[#allocation32_spill]] }
 0x4c6   : > { %s3325_s28 = sld [smem:[#allocation30_spill]]  ;;  %s3329_s18 = smov %s2653_s19 }
 0x4c7   : > { %s3326_s24 = sld [smem:[#allocation27_spill]]  ;;  %s3331_s20 = smov %s2661_s21 }
 0x4c8   : > { %s3327_s14 = sld [smem:[#allocation28_spill]]  ;;  %s3332_s21 = smov %s2665_s22 }
 0x4c9   : > { %s3328_s26 = sld [smem:[#allocation31_spill]]  ;;  %s3334_s23 = smov %s2677_s25 }
 0x4ca   :  { %29 = sbr.rel (!%p27_p10) target bundleno = 22 (0x16), region = 169 }
 0x4cb   : > { %s3330_s19 = smov %s3324_s12 }
 0x4cc   : > { %s3333_s22 = smov %s3325_s28 }
 0x4ce   : > { %s3335_s25 = smov %s3327_s14 }
 0x4cf   :  { %1598 = vsyncpa [#allocation5], 1 }
 0x4d0   :  { %1600 = vsyncpa [#allocation5 + $0x1], 1 }
 0x4d1   :  { %1601 = vsyncpa [#allocation8], 1 }
 0x4d2   :  { %1603 = vsyncpa [#allocation8 + $0x1], 1 }
 0x4d3   :  { %1604 = vsyncpa [#allocation11], 1 }
 0x4d4   :  { %1606 = vsyncpa [#allocation11 + $0x1], 1 }
 0x4d5   :  { %1607 = vsyncpa [#allocation14], 1 }
 0x4d6   :  { %1608 = vsyncpa [#allocation6], 1 }
 0x4d7   :  { %1610 = vsyncpa [#allocation6 + $0x1], 1 }

</bundles_post_ra>
